<compile_context>
chip_gen: v6e
topology: v6e:2x2x1
jax: 0.10.0
libtpu: 0.0.40
codegen_flags: <defaults>
</compile_context>

<pallas_src>
import jax
import jax.numpy as jnp
from jax.experimental import pallas as pl
from jax.experimental.pallas import tpu as pltpu  # noqa: F401  (TPU backend assumed)

EPS = 1e-5
C = 48            # channels after the view
KH = KW = 3       # depthwise kernel
OH = OW = 14      # output spatial (28 / stride 2)
HW = OH * OW      # 196 true spatial positions
HWP = 256         # spatial padded to a full lane multiple (2 x 128)


def _fused_kernel(taps_ref, wdw_ref, g1_ref, wpw_ref, g2_ref, b2_ref, out_ref):
    # taps_ref: (9, C, HWP)  -- 9 shifted stride-2 views, channels in sublanes,
    #                           spatial in lanes, lanes [196:256] are zero
    # wdw_ref : (9, C, 1)    -- depthwise 3x3 weights flattened over (kh, kw)
    # g1_ref  : (C, 1)       -- BN1 gamma (beta cancels through BN2, not needed)
    # wpw_ref : (C, C)       -- 1x1 conv weight, (out_ch, in_ch)
    # g2_ref  : (C, 1), b2_ref: (C, 1) -- BN2 affine params
    # out_ref : (C, HWP)

    # ---- depthwise 3x3 / stride-2 conv: 9 taps, 3 independent partial sums (ILP)
    a0 = (taps_ref[0] * wdw_ref[0] + taps_ref[1] * wdw_ref[1]
          + taps_ref[2] * wdw_ref[2])
    a1 = (taps_ref[3] * wdw_ref[3] + taps_ref[4] * wdw_ref[4]
          + taps_ref[5] * wdw_ref[5])
    a2 = (taps_ref[6] * wdw_ref[6] + taps_ref[7] * wdw_ref[7]
          + taps_ref[8] * wdw_ref[8])
    acc = (a0 + a1) + a2                                   # (C, HWP), padded lanes == 0

    inv_n = jnp.float32(1.0 / HW)                          # divide by TRUE count (196)

    # ---- BN1 statistics, single pass (padded lanes are zero -> sums unaffected)
    s1 = jnp.sum(acc, axis=1, keepdims=True)               # (C, 1)
    q1 = jnp.sum(acc * acc, axis=1, keepdims=True)         # (C, 1)
    m1 = s1 * inv_n
    v1 = q1 * inv_n - m1 * m1
    # BN1 fold: only the per-input-channel scale matters (shift + b1 cancel in BN2).
    scale1 = g1_ref[...] * jax.lax.rsqrt(v1 + EPS)         # (C, 1)
    y = acc * scale1                                       # (C, HWP); padded lanes stay 0

    # ---- 1x1 conv (48 -> 48): one lane-dense MXU pass, N = 256
    z = jnp.dot(wpw_ref[...], y, preferred_element_type=jnp.float32)   # (C, HWP)

    # ---- BN2, single-pass stats (z padded lanes are zero)
    s2 = jnp.sum(z, axis=1, keepdims=True)
    q2 = jnp.sum(z * z, axis=1, keepdims=True)
    m2 = s2 * inv_n
    v2 = q2 * inv_n - m2 * m2
    out_ref[...] = (z - m2) * (g2_ref[...] * jax.lax.rsqrt(v2 + EPS)) + b2_ref[...]


def fused_forward(x93, x86, x88, x89, params):
    """Full M.forward. Returns NCHW (1, 48, 14, 14) float32."""
    # x94 = x93.view(x86, -1, x88, x89)
    x = x93.reshape(x86, -1, x88, x89).astype(jnp.float32)      # (1, 48, 28, 28)
    n, c, h, w = x.shape
    assert (n, c, h, w) == (1, C, 28, 28)

    # Channels-first already matches the kernel layout -> no transposes anywhere.
    xc = x[0]                                                    # (48, 28, 28)
    xp = jnp.pad(xc, ((0, 0), (1, 1), (1, 1)))                   # (48, 30, 30)

    # Stride-2 3x3 tap extraction (pure slicing, channels untouched).
    taps = jnp.stack(
        [xp[:, kh:kh + 2 * OH:2, kw:kw + 2 * OW:2].reshape(C, HW)
         for kh in range(KH) for kw in range(KW)],
        axis=0,
    )                                                            # (9, 48, 196)
    taps = jnp.pad(taps, ((0, 0), (0, 0), (0, HWP - HW)))        # (9, 48, 256), zeros

    # Depthwise weight (oc, kh, kw) -> (kh*kw, oc, 1)
    wdw_flat = jnp.transpose(params["wdw"], (1, 2, 0)).reshape(KH * KW, C, 1)
    # 1x1 conv weight stays (out_ch, in_ch): z = W @ y
    wpw = params["wpw"]

    g1 = params["g1"].reshape(C, 1)
    g2 = params["g2"].reshape(C, 1)
    b2 = params["b2"].reshape(C, 1)
    # params["b1"] cancels exactly through BN2's mean subtraction -> not needed.

    out_flat = pl.pallas_call(
        _fused_kernel,
        out_shape=jax.ShapeDtypeStruct((C, HWP), jnp.float32),
        grid=(1,),
        in_specs=[
            pl.BlockSpec((KH * KW, C, HWP), lambda i: (0, 0, 0)),
            pl.BlockSpec((KH * KW, C, 1), lambda i: (0, 0, 0)),
            pl.BlockSpec((C, 1), lambda i: (0, 0)),
            pl.BlockSpec((C, C), lambda i: (0, 0)),
            pl.BlockSpec((C, 1), lambda i: (0, 0)),
            pl.BlockSpec((C, 1), lambda i: (0, 0)),
        ],
        out_specs=pl.BlockSpec((C, HWP), lambda i: (0, 0)),
    )(taps, wdw_flat, g1, wpw, g2, b2)

    # (C, HWP) -> drop lane padding -> (1, C, OH, OW), already NCHW (no transpose).
    out = out_flat[:, :HW].reshape(C, OH, OW)[None]
    return out


# ------------------------- pure-JAX reference (sanity check) -----------------
def _bn_train(x, g, b):
    m = jnp.mean(x, axis=(0, 2, 3), keepdims=True)
    v = jnp.mean(jnp.square(x - m), axis=(0, 2, 3), keepdims=True)
    return (x - m) * jax.lax.rsqrt(v + EPS) * g.reshape(1, -1, 1, 1) + b.reshape(1, -1, 1, 1)


def reference_forward(x93, x86, x88, x89, p):
    x = x93.reshape(x86, -1, x88, x89).astype(jnp.float32)
    y = jax.lax.conv_general_dilated(
        x, p["wdw"].reshape(C, 1, KH, KW), window_strides=(2, 2),
        padding=((1, 1), (1, 1)), feature_group_count=C,
        dimension_numbers=("NCHW", "OIHW", "NCHW"),
        precision=jax.lax.Precision.HIGHEST)
    y = _bn_train(y, p["g1"], p["b1"])
    z = jax.lax.conv_general_dilated(
        y, p["wpw"].reshape(C, C, 1, 1), window_strides=(1, 1),
        padding=((0, 0), (0, 0)),
        dimension_numbers=("NCHW", "OIHW", "NCHW"),
        precision=jax.lax.Precision.HIGHEST)
    return _bn_train(z, p["g2"], p["b2"])


if __name__ == "__main__":
    key = jax.random.PRNGKey(0)
    kx, k1, k2, k3, k4, k5, k6 = jax.random.split(key, 7)

    # deterministic synthetic parameters (shapes taken from the torch module)
    params = {
        "wdw": 0.2 * jax.random.normal(k1, (C, KH, KW), jnp.float32),  # conv2d15 (48,1,3,3) squeezed
        "g1": 1.0 + 0.1 * jax.random.normal(k2, (C,), jnp.float32),
        "b1": 0.1 * jax.random.normal(k3, (C,), jnp.float32),
        "wpw": 0.2 * jax.random.normal(k4, (C, C), jnp.float32),       # conv2d16 (48,48,1,1) squeezed
        "g2": 1.0 + 0.1 * jax.random.normal(k5, (C,), jnp.float32),
        "b2": 0.1 * jax.random.normal(k6, (C,), jnp.float32),
    }

    # inputs exactly as the torch script implies
    x93 = jax.random.normal(kx, (1, 24, 2, 28, 28), jnp.float32)
    x86, x88, x89 = 1, 28, 28

    out = fused_forward(x93, x86, x88, x89, params)
    out = jax.block_until_ready(out)

    ref = reference_forward(x93, x86, x88, x89, params)
    assert out.shape == (1, 48, 14, 14)
    assert bool(jnp.allclose(out, ref, atol=1e-2, rtol=1e-2)), "mismatch vs reference"

    print("KERNEL_OK")
</pallas_src>

<mosaic_0001>
module attributes {stable_mosaic.version = 11 : i64} {
  func.func @_fused_kernel(%arg0: i32, %arg1: memref<9x48x256xf32, #tpu.memory_space<vmem>>, %arg2: memref<9x48x1xf32, #tpu.memory_space<vmem>>, %arg3: memref<48x1xf32, #tpu.memory_space<vmem>>, %arg4: memref<48x48xf32, #tpu.memory_space<vmem>>, %arg5: memref<48x1xf32, #tpu.memory_space<vmem>>, %arg6: memref<48x1xf32, #tpu.memory_space<vmem>>, %arg7: memref<48x256xf32, #tpu.memory_space<vmem>>) attributes {dimension_semantics = [#tpu.dimension_semantics<arbitrary>], iteration_bounds = array<i64: 1>, scalar_prefetch = 0 : i64, scratch_operands = 0 : i64, tpu.core_type = #tpu.core_type<tc>, window_params = [{pipeline_mode = #tpu.pipeline_mode<synchronous>, transform_indices = @transform_0, window_bounds = array<i64: 9, 48, 256>}, {pipeline_mode = #tpu.pipeline_mode<synchronous>, transform_indices = @transform_1, window_bounds = array<i64: 9, 48, 1>}, {pipeline_mode = #tpu.pipeline_mode<synchronous>, transform_indices = @transform_2, window_bounds = array<i64: 48, 1>}, {pipeline_mode = #tpu.pipeline_mode<synchronous>, transform_indices = @transform_3, window_bounds = array<i64: 48, 48>}, {pipeline_mode = #tpu.pipeline_mode<synchronous>, transform_indices = @transform_4, window_bounds = array<i64: 48, 1>}, {pipeline_mode = #tpu.pipeline_mode<synchronous>, transform_indices = @transform_5, window_bounds = array<i64: 48, 1>}, {pipeline_mode = #tpu.pipeline_mode<synchronous>, transform_indices = @transform_6, window_bounds = array<i64: 48, 256>}]} {
    %c0 = arith.constant 0 : index
    %c0_0 = arith.constant 0 : index
    %c0_1 = arith.constant 0 : index
    %0 = vector.load %arg1[%c0, %c0_0, %c0_1] : memref<9x48x256xf32, #tpu.memory_space<vmem>>, vector<1x48x256xf32>
    %1 = vector.shape_cast %0 : vector<1x48x256xf32> to vector<48x256xf32>
    %c0_2 = arith.constant 0 : index
    %c0_3 = arith.constant 0 : index
    %c0_4 = arith.constant 0 : index
    %2 = vector.load %arg2[%c0_2, %c0_3, %c0_4] : memref<9x48x1xf32, #tpu.memory_space<vmem>>, vector<1x48x1xf32>
    %3 = vector.shape_cast %2 : vector<1x48x1xf32> to vector<48x1xf32>
    %4 = vector.broadcast %3 : vector<48x1xf32> to vector<48x256xf32>
    %5 = arith.mulf %1, %4 : vector<48x256xf32>
    %c1 = arith.constant 1 : index
    %c0_5 = arith.constant 0 : index
    %c0_6 = arith.constant 0 : index
    %6 = vector.load %arg1[%c1, %c0_5, %c0_6] : memref<9x48x256xf32, #tpu.memory_space<vmem>>, vector<1x48x256xf32>
    %7 = vector.shape_cast %6 : vector<1x48x256xf32> to vector<48x256xf32>
    %c1_7 = arith.constant 1 : index
    %c0_8 = arith.constant 0 : index
    %c0_9 = arith.constant 0 : index
    %8 = vector.load %arg2[%c1_7, %c0_8, %c0_9] : memref<9x48x1xf32, #tpu.memory_space<vmem>>, vector<1x48x1xf32>
    %9 = vector.shape_cast %8 : vector<1x48x1xf32> to vector<48x1xf32>
    %10 = vector.broadcast %9 : vector<48x1xf32> to vector<48x256xf32>
    %11 = arith.mulf %7, %10 : vector<48x256xf32>
    %12 = arith.addf %5, %11 : vector<48x256xf32>
    %c2 = arith.constant 2 : index
    %c0_10 = arith.constant 0 : index
    %c0_11 = arith.constant 0 : index
    %13 = vector.load %arg1[%c2, %c0_10, %c0_11] : memref<9x48x256xf32, #tpu.memory_space<vmem>>, vector<1x48x256xf32>
    %14 = vector.shape_cast %13 : vector<1x48x256xf32> to vector<48x256xf32>
    %c2_12 = arith.constant 2 : index
    %c0_13 = arith.constant 0 : index
    %c0_14 = arith.constant 0 : index
    %15 = vector.load %arg2[%c2_12, %c0_13, %c0_14] : memref<9x48x1xf32, #tpu.memory_space<vmem>>, vector<1x48x1xf32>
    %16 = vector.shape_cast %15 : vector<1x48x1xf32> to vector<48x1xf32>
    %17 = vector.broadcast %16 : vector<48x1xf32> to vector<48x256xf32>
    %18 = arith.mulf %14, %17 : vector<48x256xf32>
    %19 = arith.addf %12, %18 : vector<48x256xf32>
    %c3 = arith.constant 3 : index
    %c0_15 = arith.constant 0 : index
    %c0_16 = arith.constant 0 : index
    %20 = vector.load %arg1[%c3, %c0_15, %c0_16] : memref<9x48x256xf32, #tpu.memory_space<vmem>>, vector<1x48x256xf32>
    %21 = vector.shape_cast %20 : vector<1x48x256xf32> to vector<48x256xf32>
    %c3_17 = arith.constant 3 : index
    %c0_18 = arith.constant 0 : index
    %c0_19 = arith.constant 0 : index
    %22 = vector.load %arg2[%c3_17, %c0_18, %c0_19] : memref<9x48x1xf32, #tpu.memory_space<vmem>>, vector<1x48x1xf32>
    %23 = vector.shape_cast %22 : vector<1x48x1xf32> to vector<48x1xf32>
    %24 = vector.broadcast %23 : vector<48x1xf32> to vector<48x256xf32>
    %25 = arith.mulf %21, %24 : vector<48x256xf32>
    %c4 = arith.constant 4 : index
    %c0_20 = arith.constant 0 : index
    %c0_21 = arith.constant 0 : index
    %26 = vector.load %arg1[%c4, %c0_20, %c0_21] : memref<9x48x256xf32, #tpu.memory_space<vmem>>, vector<1x48x256xf32>
    %27 = vector.shape_cast %26 : vector<1x48x256xf32> to vector<48x256xf32>
    %c4_22 = arith.constant 4 : index
    %c0_23 = arith.constant 0 : index
    %c0_24 = arith.constant 0 : index
    %28 = vector.load %arg2[%c4_22, %c0_23, %c0_24] : memref<9x48x1xf32, #tpu.memory_space<vmem>>, vector<1x48x1xf32>
    %29 = vector.shape_cast %28 : vector<1x48x1xf32> to vector<48x1xf32>
    %30 = vector.broadcast %29 : vector<48x1xf32> to vector<48x256xf32>
    %31 = arith.mulf %27, %30 : vector<48x256xf32>
    %32 = arith.addf %25, %31 : vector<48x256xf32>
    %c5 = arith.constant 5 : index
    %c0_25 = arith.constant 0 : index
    %c0_26 = arith.constant 0 : index
    %33 = vector.load %arg1[%c5, %c0_25, %c0_26] : memref<9x48x256xf32, #tpu.memory_space<vmem>>, vector<1x48x256xf32>
    %34 = vector.shape_cast %33 : vector<1x48x256xf32> to vector<48x256xf32>
    %c5_27 = arith.constant 5 : index
    %c0_28 = arith.constant 0 : index
    %c0_29 = arith.constant 0 : index
    %35 = vector.load %arg2[%c5_27, %c0_28, %c0_29] : memref<9x48x1xf32, #tpu.memory_space<vmem>>, vector<1x48x1xf32>
    %36 = vector.shape_cast %35 : vector<1x48x1xf32> to vector<48x1xf32>
    %37 = vector.broadcast %36 : vector<48x1xf32> to vector<48x256xf32>
    %38 = arith.mulf %34, %37 : vector<48x256xf32>
    %39 = arith.addf %32, %38 : vector<48x256xf32>
    %c6 = arith.constant 6 : index
    %c0_30 = arith.constant 0 : index
    %c0_31 = arith.constant 0 : index
    %40 = vector.load %arg1[%c6, %c0_30, %c0_31] : memref<9x48x256xf32, #tpu.memory_space<vmem>>, vector<1x48x256xf32>
    %41 = vector.shape_cast %40 : vector<1x48x256xf32> to vector<48x256xf32>
    %c6_32 = arith.constant 6 : index
    %c0_33 = arith.constant 0 : index
    %c0_34 = arith.constant 0 : index
    %42 = vector.load %arg2[%c6_32, %c0_33, %c0_34] : memref<9x48x1xf32, #tpu.memory_space<vmem>>, vector<1x48x1xf32>
    %43 = vector.shape_cast %42 : vector<1x48x1xf32> to vector<48x1xf32>
    %44 = vector.broadcast %43 : vector<48x1xf32> to vector<48x256xf32>
    %45 = arith.mulf %41, %44 : vector<48x256xf32>
    %c7 = arith.constant 7 : index
    %c0_35 = arith.constant 0 : index
    %c0_36 = arith.constant 0 : index
    %46 = vector.load %arg1[%c7, %c0_35, %c0_36] : memref<9x48x256xf32, #tpu.memory_space<vmem>>, vector<1x48x256xf32>
    %47 = vector.shape_cast %46 : vector<1x48x256xf32> to vector<48x256xf32>
    %c7_37 = arith.constant 7 : index
    %c0_38 = arith.constant 0 : index
    %c0_39 = arith.constant 0 : index
    %48 = vector.load %arg2[%c7_37, %c0_38, %c0_39] : memref<9x48x1xf32, #tpu.memory_space<vmem>>, vector<1x48x1xf32>
    %49 = vector.shape_cast %48 : vector<1x48x1xf32> to vector<48x1xf32>
    %50 = vector.broadcast %49 : vector<48x1xf32> to vector<48x256xf32>
    %51 = arith.mulf %47, %50 : vector<48x256xf32>
    %52 = arith.addf %45, %51 : vector<48x256xf32>
    %c8 = arith.constant 8 : index
    %c0_40 = arith.constant 0 : index
    %c0_41 = arith.constant 0 : index
    %53 = vector.load %arg1[%c8, %c0_40, %c0_41] : memref<9x48x256xf32, #tpu.memory_space<vmem>>, vector<1x48x256xf32>
    %54 = vector.shape_cast %53 : vector<1x48x256xf32> to vector<48x256xf32>
    %c8_42 = arith.constant 8 : index
    %c0_43 = arith.constant 0 : index
    %c0_44 = arith.constant 0 : index
    %55 = vector.load %arg2[%c8_42, %c0_43, %c0_44] : memref<9x48x1xf32, #tpu.memory_space<vmem>>, vector<1x48x1xf32>
    %56 = vector.shape_cast %55 : vector<1x48x1xf32> to vector<48x1xf32>
    %57 = vector.broadcast %56 : vector<48x1xf32> to vector<48x256xf32>
    %58 = arith.mulf %54, %57 : vector<48x256xf32>
    %59 = arith.addf %52, %58 : vector<48x256xf32>
    %60 = arith.addf %19, %39 : vector<48x256xf32>
    %61 = arith.addf %60, %59 : vector<48x256xf32>
    %cst = arith.constant dense<0.000000e+00> : vector<48xf32>
    %62 = vector.multi_reduction <add>, %61, %cst [1] : vector<48x256xf32> to vector<48xf32>
    %63 = vector.shape_cast %62 : vector<48xf32> to vector<48x1xf32>
    %64 = arith.mulf %61, %61 : vector<48x256xf32>
    %cst_45 = arith.constant dense<0.000000e+00> : vector<48xf32>
    %65 = vector.multi_reduction <add>, %64, %cst_45 [1] : vector<48x256xf32> to vector<48xf32>
    %66 = vector.shape_cast %65 : vector<48xf32> to vector<48x1xf32>
    %cst_46 = arith.constant 0.00510204071 : f32
    %67 = vector.broadcast %cst_46 : f32 to vector<48x1xf32>
    %68 = arith.mulf %63, %67 : vector<48x1xf32>
    %cst_47 = arith.constant 0.00510204071 : f32
    %69 = vector.broadcast %cst_47 : f32 to vector<48x1xf32>
    %70 = arith.mulf %66, %69 : vector<48x1xf32>
    %71 = arith.mulf %68, %68 : vector<48x1xf32>
    %72 = arith.subf %70, %71 : vector<48x1xf32>
    %c0_48 = arith.constant 0 : index
    %c0_49 = arith.constant 0 : index
    %73 = vector.load %arg3[%c0_48, %c0_49] : memref<48x1xf32, #tpu.memory_space<vmem>>, vector<48x1xf32>
    %cst_50 = arith.constant 9.99999974E-6 : f32
    %74 = vector.broadcast %cst_50 : f32 to vector<48x1xf32>
    %75 = arith.addf %72, %74 : vector<48x1xf32>
    %76 = math.rsqrt %75 : vector<48x1xf32>
    %77 = arith.mulf %73, %76 : vector<48x1xf32>
    %78 = vector.broadcast %77 : vector<48x1xf32> to vector<48x256xf32>
    %79 = arith.mulf %61, %78 : vector<48x256xf32>
    %c0_51 = arith.constant 0 : index
    %c0_52 = arith.constant 0 : index
    %80 = vector.load %arg4[%c0_51, %c0_52] : memref<48x48xf32, #tpu.memory_space<vmem>>, vector<48x48xf32>
    %cst_53 = arith.constant dense<0.000000e+00> : vector<48x256xf32>
    %81 = tpu.matmul %80, %79, %cst_53 {dimension_numbers = #tpu.dot_dimension_numbers<[1], [0], [0], [1], [0, 0, 1, 1], [], []>} : vector<48x48xf32>, vector<48x256xf32>, vector<48x256xf32> -> vector<48x256xf32>
    %cst_54 = arith.constant dense<0.000000e+00> : vector<48xf32>
    %82 = vector.multi_reduction <add>, %81, %cst_54 [1] : vector<48x256xf32> to vector<48xf32>
    %83 = vector.shape_cast %82 : vector<48xf32> to vector<48x1xf32>
    %84 = arith.mulf %81, %81 : vector<48x256xf32>
    %cst_55 = arith.constant dense<0.000000e+00> : vector<48xf32>
    %85 = vector.multi_reduction <add>, %84, %cst_55 [1] : vector<48x256xf32> to vector<48xf32>
    %86 = vector.shape_cast %85 : vector<48xf32> to vector<48x1xf32>
    %cst_56 = arith.constant 0.00510204071 : f32
    %87 = vector.broadcast %cst_56 : f32 to vector<48x1xf32>
    %88 = arith.mulf %83, %87 : vector<48x1xf32>
    %cst_57 = arith.constant 0.00510204071 : f32
    %89 = vector.broadcast %cst_57 : f32 to vector<48x1xf32>
    %90 = arith.mulf %86, %89 : vector<48x1xf32>
    %91 = arith.mulf %88, %88 : vector<48x1xf32>
    %92 = arith.subf %90, %91 : vector<48x1xf32>
    %93 = vector.broadcast %88 : vector<48x1xf32> to vector<48x256xf32>
    %94 = arith.subf %81, %93 : vector<48x256xf32>
    %c0_58 = arith.constant 0 : index
    %c0_59 = arith.constant 0 : index
    %95 = vector.load %arg5[%c0_58, %c0_59] : memref<48x1xf32, #tpu.memory_space<vmem>>, vector<48x1xf32>
    %cst_60 = arith.constant 9.99999974E-6 : f32
    %96 = vector.broadcast %cst_60 : f32 to vector<48x1xf32>
    %97 = arith.addf %92, %96 : vector<48x1xf32>
    %98 = math.rsqrt %97 : vector<48x1xf32>
    %99 = arith.mulf %95, %98 : vector<48x1xf32>
    %100 = vector.broadcast %99 : vector<48x1xf32> to vector<48x256xf32>
    %101 = arith.mulf %94, %100 : vector<48x256xf32>
    %c0_61 = arith.constant 0 : index
    %c0_62 = arith.constant 0 : index
    %102 = vector.load %arg6[%c0_61, %c0_62] : memref<48x1xf32, #tpu.memory_space<vmem>>, vector<48x1xf32>
    %103 = vector.broadcast %102 : vector<48x1xf32> to vector<48x256xf32>
    %104 = arith.addf %101, %103 : vector<48x256xf32>
    %c0_63 = arith.constant 0 : index
    %c0_64 = arith.constant 0 : index
    %105 = vector.load %arg7[%c0_63, %c0_64] : memref<48x256xf32, #tpu.memory_space<vmem>>, vector<48x256xf32>
    tpu.vector_store %arg7[%c0_63, %c0_64], %104 {strides = array<i32>} : memref<48x256xf32, #tpu.memory_space<vmem>>, vector<48x256xf32>,
    return
  }
  func.func @transform_0(%arg0: i32) -> (i32, i32, i32) {
    %c0_i32 = arith.constant 0 : i32
    %c0_i32_0 = arith.constant 0 : i32
    %c0_i32_1 = arith.constant 0 : i32
    %c0_i32_2 = arith.constant 0 : i32
    return %c0_i32, %c0_i32_0, %c0_i32_1 : i32, i32, i32
  }
  func.func @transform_1(%arg0: i32) -> (i32, i32, i32) {
    %c0_i32 = arith.constant 0 : i32
    %c0_i32_0 = arith.constant 0 : i32
    %c0_i32_1 = arith.constant 0 : i32
    %c0_i32_2 = arith.constant 0 : i32
    return %c0_i32, %c0_i32_0, %c0_i32_1 : i32, i32, i32
  }
  func.func @transform_2(%arg0: i32) -> (i32, i32) {
    %c0_i32 = arith.constant 0 : i32
    %c0_i32_0 = arith.constant 0 : i32
    %c0_i32_1 = arith.constant 0 : i32
    return %c0_i32, %c0_i32_0 : i32, i32
  }
  func.func @transform_3(%arg0: i32) -> (i32, i32) {
    %c0_i32 = arith.constant 0 : i32
    %c0_i32_0 = arith.constant 0 : i32
    %c0_i32_1 = arith.constant 0 : i32
    return %c0_i32, %c0_i32_0 : i32, i32
  }
  func.func @transform_4(%arg0: i32) -> (i32, i32) {
    %c0_i32 = arith.constant 0 : i32
    %c0_i32_0 = arith.constant 0 : i32
    %c0_i32_1 = arith.constant 0 : i32
    return %c0_i32, %c0_i32_0 : i32, i32
  }
  func.func @transform_5(%arg0: i32) -> (i32, i32) {
    %c0_i32 = arith.constant 0 : i32
    %c0_i32_0 = arith.constant 0 : i32
    %c0_i32_1 = arith.constant 0 : i32
    return %c0_i32, %c0_i32_0 : i32, i32
  }
  func.func @transform_6(%arg0: i32) -> (i32, i32) {
    %c0_i32 = arith.constant 0 : i32
    %c0_i32_0 = arith.constant 0 : i32
    %c0_i32_1 = arith.constant 0 : i32
    return %c0_i32, %c0_i32_0 : i32, i32
  }
}

</mosaic_0001>

<bundles_post_ra>
// kernel: tpu_custom_call.1
= control target key start
LH: loop header
LB: loop body
LE: loop exit
PB: predicated region body
PF: predicated region fallthrough
CT: control target
= control target key end

     0   :  { %11 = vsyncpa [#allocation3], 0  ;;  %s1923_s0 = inlined_call_operand.hbm [shape: f32[9,48,256], index: 0, kind: input, shape index: {}]   ;;  %s1924_s1 = inlined_call_operand.vmem [shape: f32[9,48,1], index: 1, kind: input, shape index: {}]   ;;  %s1925_s2 = inlined_call_operand.vmem [shape: f32[48,1], index: 2, kind: input, shape index: {}]   ;;  %s1926_s3 = inlined_call_operand.vmem [shape: f32[48,48], index: 3, kind: input, shape index: {}]   ;;  %s1927_s4 = inlined_call_operand.vmem [shape: f32[48,1], index: 4, kind: input, shape index: {}]   ;;  %s1928_s5 = inlined_call_operand.vmem [shape: f32[48,1], index: 5, kind: input, shape index: {}]   ;;  %s1929_s6 = inlined_call_operand.hbm [shape: f32[48,256], index: 6, kind: output, shape index: {}]  }
   0x1   :  { %12 = vsyncpa [#allocation4], 0  ;;  %s1323_s21 = smov [#allocation2]  }
   0x2   :  { %s18_s22 = sshll.u32 %s1323_s21, 4  ;;  %s19_s22 = int_to_ptr.vmem [resolvable:$true] %s18_s22 }
   0x3   :  { %s1287_s23 = scalar_lea.vmem %s19_s22, 13824  ;;  %p1292_p1 = scmp.lt.s32.totalorder %s19_s22, %s19_s22 }
   0x4   :  { %p1288_p0 = scmp.ne.s32.totalorder %s19_s22, %s1287_s23  ;;  %p1293_p2 = scmp.lt.s32.totalorder %s1287_s23, %s1287_s23 }
   0x6   :  { %p1294_p3 = por %p1293_p2, %p1292_p1 }
   0x8   :  { %p1295_p4 = pnand %p1294_p3, %p1288_p0 }
   0xa   :  { %1298 = shalt.err (!%p1295_p4)
}
   0xb   :  { %s1324_s24 = smov 256   ;;  %s1325_s25 = smov 16  }
   0xc   :  { %24 = dma.hbm_to_vmem [thread:$0]  %s1923_s0, 13824, %s19_s22, [#allocation3], %s1324_s24, %s1324_s24, %s1325_s25  }
   0xd   :  { %1319 = dma.done.wait [#allocation3], 13824  }
   0xe   :  { %1320 = vsyncadd [#allocation3], 4294953472  ;;  %v1326_v0 = vmov 0   ;;  %v1198_v1 = vld [vmem:[%s1924_s1 + $0xb8] sm:$0xff]  ;;  %v55_v2 = vld [vmem:[%s1924_s1 + $0x28] sm:$0xff]  ;;  %vm834_vm0 = vcmask 392192  }
   0xf   :  { %1254 = vset.pattern.permute.xlu1 %v1326_v0  ;;  %1253 = vset.pattern.permute.xlu0 %v1326_v0  ;;  %v1204_v3 = vld [vmem:[%s1924_s1 + $0xe8] sm:$0xff]  ;;  %v1186_v4 = vld [vmem:[%s1924_s1 + $0x58] sm:$0xff]  ;;  %v1185_v5 = vld [vmem:[%s1924_s1 + $0x50] sm:$0xff] }
  0x10   :  { %293 = vperm.xlu1 %1254, %v1198_v1   ;;  %83 = vperm.xlu0 %1253, %v55_v2   ;;  %v54_v6 = vld [vmem:[%s1924_s1 + $0x20] sm:$0xff]  ;;  %v1197_v7 = vld [vmem:[%s1924_s1 + $0xb0] sm:$0xff]  ;;  %v1192_v8 = vld [vmem:[%s1924_s1 + $0x88] sm:$0xff] }
  0x11   :  { %v1210_v9 = vld [vmem:[%s1924_s1 + $0x118] sm:$0xff]  ;;  %v1203_v10 = vld [vmem:[%s1924_s1 + $0xe0] sm:$0xff]  ;;  %v1216_v12 = vld [vmem:[%s1924_s1 + $0x148] sm:$0xff] }
  0x12   :  { %v1222_v11 = vld [vmem:[%s1924_s1 + $0x178] sm:$0xff]  ;;  %v1184_v13 = vld [vmem:[%s1924_s1 + $0x48] sm:$0xff]  ;;  %v1191_v16 = vld [vmem:[%s1924_s1 + $0x80] sm:$0xff] }
  0x13   :  { %v53_v14 = vld [vmem:[%s1924_s1 + $0x18] sm:$0xff]  ;;  %v1196_v15 = vld [vmem:[%s1924_s1 + $0xa8] sm:$0xff]  ;;  %v1209_v17 = vld [vmem:[%s1924_s1 + $0x110] sm:$0xff] }
  0x14   :  { %355 = vperm.xlu1 %1254, %v1204_v3   ;;  %145 = vperm.xlu0 %1253, %v1186_v4   ;;  %v1202_v18 = vld [vmem:[%s1924_s1 + $0xd8] sm:$0xff]  ;;  %v1221_v19 = vld [vmem:[%s1924_s1 + $0x170] sm:$0xff]  ;;  %v1215_v20 = vld [vmem:[%s1924_s1 + $0x140] sm:$0xff] }
  0x15   :  { %v1228_v21 = vld [vmem:[%s1924_s1 + $0x1a8] sm:$0xff]  ;;  %v52_v22 = vld [vmem:[%s1924_s1 + $0x10] sm:$0xff]  ;;  %v1183_v23 = vld [vmem:[%s1924_s1 + $0x40] sm:$0xff] }
  0x16   :  { %v1190_v24 = vld [vmem:[%s1924_s1 + $0x78] sm:$0xff]  ;;  %v1195_v25 = vld [vmem:[%s1924_s1 + $0xa0] sm:$0xff]  ;;  %v1201_v26 = vld [vmem:[%s1924_s1 + $0xd0] sm:$0xff] }
  0x17   :  { %v1208_v27 = vld [vmem:[%s1924_s1 + $0x108] sm:$0xff]  ;;  %v1214_v28 = vld [vmem:[%s1924_s1 + $0x138] sm:$0xff]  ;;  %v1227_v30 = vld [vmem:[%s1924_s1 + $0x1a0] sm:$0xff] }
  0x18   :  { %140 = vperm.xlu1 %1254, %v1185_v5   ;;  %78 = vperm.xlu0 %1253, %v54_v6   ;;  %v1220_v29 = vld [vmem:[%s1924_s1 + $0x168] sm:$0xff]  ;;  %v1182_v31 = vld [vmem:[%s1924_s1 + $0x38] sm:$0xff]  ;;  %v1189_v34 = vld [vmem:[%s1924_s1 + $0x70] sm:$0xff] }
  0x19   :  { %v51_v32 = vld [vmem:[%s1924_s1 + $0x8] sm:$0xff]  ;;  %v1194_v33 = vld [vmem:[%s1924_s1 + $0x98] sm:$0xff]  ;;  %v1207_v35 = vld [vmem:[%s1924_s1 + $0x100] sm:$0xff] }
  0x1a   :  { %v1200_v36 = vld [vmem:[%s1924_s1 + $0xc8] sm:$0xff]  ;;  %v1219_v37 = vld [vmem:[%s1924_s1 + $0x160] sm:$0xff]  ;;  %v1213_v38 = vld [vmem:[%s1924_s1 + $0x130] sm:$0xff] }
  0x1b   :  { %v1226_v39 = vld [vmem:[%s1924_s1 + $0x198] sm:$0xff]  ;;  %v50_v40 = vld [vmem:[%s1924_s1] sm:$0xff]  ;;  %v1181_v41 = vld [vmem:[%s1924_s1 + $0x30] sm:$0xff] }
  0x1c   :  { %288 = vperm.xlu1 %1254, %v1197_v7   ;;  %219 = vperm.xlu0 %1253, %v1192_v8   ;;  %v1188_v42 = vld [vmem:[%s1924_s1 + $0x68] sm:$0xff]  ;;  %v1193_v43 = vld [vmem:[%s1924_s1 + $0x90] sm:$0xff]  ;;  %v1199_v44 = vld [vmem:[%s1924_s1 + $0xc0] sm:$0xff] }
  0x1d   :  { %v1206_v45 = vld [vmem:[%s1924_s1 + $0xf8] sm:$0xff]  ;;  %v1212_v46 = vld [vmem:[%s1924_s1 + $0x128] sm:$0xff]  ;;  %v1225_v48 = vld [vmem:[%s1924_s1 + $0x190] sm:$0xff] }
  0x1e   :  { %v1218_v47 = vld [vmem:[%s1924_s1 + $0x158] sm:$0xff]  ;;  %v1187_v49 = vld [vmem:[%s1924_s1 + $0x60] sm:$0xff]  ;;  %v1205_v50 = vld [vmem:[%s1924_s1 + $0xf0] sm:$0xff] }
  0x1f   :  { %v1211_v51 = vld [vmem:[%s1924_s1 + $0x120] sm:$0xff]  ;;  %v1217_v52 = vld [vmem:[%s1924_s1 + $0x150] sm:$0xff]  ;;  %v1224_v53 = vld [vmem:[%s1924_s1 + $0x188] sm:$0xff] }
  0x20   :  { %429 = vperm.xlu1 %1254, %v1210_v9   ;;  %350 = vperm.xlu0 %1253, %v1203_v10   ;;  %v1223_v54 = vld [vmem:[%s1924_s1 + $0x180] sm:$0xff]  ;;  %v257_v5 = vld [vmem:[#allocation2 + $0x170] sm:$0xff]  ;;  %v258_v8 = vld [vmem:[#allocation2 + $0x178] sm:$0xff] }
  0x21   :  { %v319_v9 = vld [vmem:[#allocation2 + $0x1d0] sm:$0xff]  ;;  %v320_v10 = vld [vmem:[#allocation2 + $0x1d8] sm:$0xff] }
  0x24   :  { %565 = vperm.xlu1 %1254, %v1222_v11   ;;  %503 = vperm.xlu0 %1253, %v1216_v12   ;;  %v48_v11 = vld [vmem:[#allocation2 + $0x50] sm:$0xff] }
  0x25   :  { %v109_v12 = vld [vmem:[#allocation2 + $0xb0] sm:$0xff] }
  0x28   :  { %135 = vperm.xlu1 %1254, %v1184_v13   ;;  %73 = vperm.xlu0 %1253, %v53_v14   ;;  %v110_v13 = vld [vmem:[#allocation2 + $0xb8] sm:$0xff] }
  0x2c   :  { %283 = vperm.xlu1 %1254, %v1196_v15   ;;  %214 = vperm.xlu0 %1253, %v1191_v16   ;;  %v49_v16 = vld [vmem:[#allocation2 + $0x58] sm:$0xff] }
  0x30   :  { %424 = vperm.xlu1 %1254, %v1209_v17   ;;  %345 = vperm.xlu0 %1253, %v1202_v18  }
  0x34   :  { %560 = vperm.xlu1 %1254, %v1221_v19   ;;  %498 = vperm.xlu0 %1253, %v1215_v20   ;;  %v393_v19 = vld [vmem:[#allocation2 + $0x230] sm:$0xff]  ;;  %v394_v20 = vld [vmem:[#allocation2 + $0x238] sm:$0xff] }
  0x38   :  { %639 = vperm.xlu0 %1253, %v1228_v21   ;;  %68 = vperm.xlu1 %1254, %v52_v22  }
  0x3c   :  { %130 = vperm.xlu0 %1253, %v1183_v23   ;;  %209 = vperm.xlu1 %1254, %v1190_v24   ;;  %v183_v23 = vld [vmem:[#allocation2 + $0x110] sm:$0xff]  ;;  %v184_v24 = vld [vmem:[#allocation2 + $0x118] sm:$0xff] }
  0x40   :  { %278 = vperm.xlu0 %1253, %v1195_v25   ;;  %340 = vperm.xlu1 %1254, %v1201_v26   ;;  %v529_v25 = vld [vmem:[#allocation2 + $0x2f0] sm:$0xff] }
  0x44   :  { %419 = vperm.xlu0 %1253, %v1208_v27   ;;  %493 = vperm.xlu1 %1254, %v1214_v28   ;;  %v530_v28 = vld [vmem:[#allocation2 + $0x2f8] sm:$0xff] }
  0x48   :  { %555 = vperm.xlu0 %1253, %v1220_v29   ;;  %634 = vperm.xlu1 %1254, %v1227_v30   ;;  %v467_v29 = vld [vmem:[#allocation2 + $0x290] sm:$0xff]  ;;  %v468_v30 = vld [vmem:[#allocation2 + $0x298] sm:$0xff] }
  0x4c   :  { %125 = vperm.xlu1 %1254, %v1182_v31   ;;  %63 = vperm.xlu0 %1253, %v51_v32  }
  0x50   :  { %273 = vperm.xlu1 %1254, %v1194_v33   ;;  %204 = vperm.xlu0 %1253, %v1189_v34  }
  0x54   :  { %414 = vperm.xlu1 %1254, %v1207_v35   ;;  %335 = vperm.xlu0 %1253, %v1200_v36  }
  0x58   :  { %550 = vperm.xlu1 %1254, %v1219_v37   ;;  %488 = vperm.xlu0 %1253, %v1213_v38  }
  0x5c   :  { %629 = vperm.xlu0 %1253, %v1226_v39   ;;  %58 = vperm.xlu1 %1254, %v50_v40  }
  0x60   :  { %120 = vperm.xlu0 %1253, %v1181_v41   ;;  %199 = vperm.xlu1 %1254, %v1188_v42  }
  0x64   :  { %268 = vperm.xlu0 %1253, %v1193_v43   ;;  %330 = vperm.xlu1 %1254, %v1199_v44  }
  0x68   :  { %409 = vperm.xlu0 %1253, %v1206_v45   ;;  %483 = vperm.xlu1 %1254, %v1212_v46  }
  0x6c   :  { %545 = vperm.xlu0 %1253, %v1218_v47   ;;  %624 = vperm.xlu1 %1254, %v1225_v48   ;;  %v603_v47 = vld [vmem:[#allocation2 + $0x350] sm:$0xff]  ;;  %v604_v48 = vld [vmem:[#allocation2 + $0x358] sm:$0xff] }
  0x70   :  { %194 = vperm.xlu0 %1253, %v1187_v49   ;;  %404 = vperm.xlu1 %1254, %v1205_v50  }
  0x74   :  { %478 = vperm.xlu0 %1253, %v1211_v51   ;;  %540 = vperm.xlu1 %1254, %v1217_v52  }
  0x78   :  { %619 = vperm.xlu0 %1253, %v1224_v53   ;;  %614 = vperm.xlu1 %1254, %v1223_v54  }
  0x8b   :  { %v294_v55 = vpop.permute.xlu1 %293  ;;  %v84_v56 = vpop.permute.xlu0 %83 }
  0x8c   :  { %v306_v14 = vmul.f32 %v294_v55, %v257_v5  ;;  %v307_v15 = vmul.f32 %v294_v55, %v258_v8  ;;  %v96_v31 = vmul.f32 %v84_v56, %v48_v11  ;;  %v97_v32 = vmul.f32 %v84_v56, %v49_v16  ;;  %v317_v11 = vld [vmem:[#allocation2 + $0x1c0] sm:$0xff] }
  0x8f   :  { %v356_v57 = vpop.permute.xlu1 %355  ;;  %v146_v58 = vpop.permute.xlu0 %145 }
  0x90   :  { %v368_v17 = vmul.f32 %v356_v57, %v319_v9  ;;  %v369_v18 = vmul.f32 %v356_v57, %v320_v10  ;;  %v158_v26 = vmul.f32 %v146_v58, %v109_v12  ;;  %v159_v27 = vmul.f32 %v146_v58, %v110_v13  ;;  %v318_v12 = vld [vmem:[#allocation2 + $0x1c8] sm:$0xff]  ;;  %v107_v13 = vld [vmem:[#allocation2 + $0xa0] sm:$0xff] }
  0x92   :  { %v380_v35 = vadd.f32 %v368_v17, %v306_v14  ;;  %v381_v36 = vadd.f32 %v369_v18, %v307_v15  ;;  %v170_v45 = vadd.f32 %v158_v26, %v96_v31  ;;  %v171_v46 = vadd.f32 %v159_v27, %v97_v32  ;;  %v108_v14 = vld [vmem:[#allocation2 + $0xa8] sm:$0xff]  ;;  %v46_v15 = vld [vmem:[#allocation2 + $0x40] sm:$0xff] }
  0x93   :  { %v1532_v59 = vpop.permute.xlu1 %140  ;;  %v1534_v60 = vpop.permute.xlu0 %78  ;;  %v47_v17 = vld [vmem:[#allocation2 + $0x48] sm:$0xff]  ;;  %v255_v18 = vld [vmem:[#allocation2 + $0x160] sm:$0xff] }
  0x94   :  { %v391_v26 = vld [vmem:[#allocation2 + $0x220] sm:$0xff]  ;;  %v392_v27 = vld [vmem:[#allocation2 + $0x228] sm:$0xff] }
  0x95   :  { %v182_v31 = vld [vmem:[#allocation2 + $0x108] sm:$0xff]  ;;  %v527_v32 = vld [vmem:[#allocation2 + $0x2e0] sm:$0xff] }
  0x97   :  { %v1536_v61 = vpop.permute.xlu1 %288  ;;  %v220_v62 = vpop.permute.xlu0 %219 }
  0x98   :  { %v232_v37 = vmul.f32 %v220_v62, %v183_v23  ;;  %v233_v38 = vmul.f32 %v220_v62, %v184_v24 }
  0x9a   :  { %v244_v51 = vadd.f32 %v232_v37, %v170_v45  ;;  %v245_v52 = vadd.f32 %v233_v38, %v171_v46  ;;  %v528_v37 = vld [vmem:[#allocation2 + $0x2e8] sm:$0xff] }
  0x9b   :  { %v430_v63 = vpop.permute.xlu1 %429  ;;  %v1538_v0 = vpop.permute.xlu0 %350  ;;  %v466_v38 = vld [vmem:[#allocation2 + $0x288] sm:$0xff] }
  0x9c   :  { %v442_v33 = vmul.f32 %v430_v63, %v393_v19  ;;  %v443_v34 = vmul.f32 %v430_v63, %v394_v20  ;;  %v256_v19 = vld [vmem:[#allocation2 + $0x168] sm:$0xff]  ;;  %v366_v24 = vmul.f32 %v1538_v0, %v317_v11 }
  0x9e   :  { %v454_v49 = vadd.f32 %v442_v33, %v380_v35  ;;  %v455_v50 = vadd.f32 %v443_v34, %v381_v36  ;;  %v94_v33 = vmul.f32 %v1534_v60, %v46_v15  ;;  %v95_v34 = vmul.f32 %v1534_v60, %v47_v17 }
  0x9f   :  { %v566_v1 = vpop.permute.xlu1 %565  ;;  %v504_v2 = vpop.permute.xlu0 %503  ;;  %v304_v35 = vmul.f32 %v1536_v61, %v255_v18  ;;  %v305_v36 = vmul.f32 %v1536_v61, %v256_v19 }
  0xa0   :  { %v578_v41 = vmul.f32 %v566_v1, %v529_v25  ;;  %v579_v42 = vmul.f32 %v566_v1, %v530_v28  ;;  %v516_v43 = vmul.f32 %v504_v2, %v467_v29  ;;  %v517_v44 = vmul.f32 %v504_v2, %v468_v30  ;;  %v181_v30 = vld [vmem:[#allocation2 + $0x100] sm:$0xff] }
  0xa1   :  { %v676_v62 = vadd.f32 %v454_v49, %v244_v51  ;;  %v677_v63 = vadd.f32 %v455_v50, %v245_v52  ;;  %v367_v25 = vmul.f32 %v1538_v0, %v318_v12  ;;  %v156_v28 = vmul.f32 %v1532_v59, %v107_v13  ;;  %v465_v0 = vld [vmem:[#allocation2 + $0x280] sm:$0xff]  ;;  %v602_v52 = vld [vmem:[#allocation2 + $0x348] sm:$0xff] }
  0xa2   :  { %v590_v55 = vadd.f32 %v578_v41, %v516_v43  ;;  %v591_v56 = vadd.f32 %v579_v42, %v517_v44  ;;  %v157_v29 = vmul.f32 %v1532_v59, %v108_v14  ;;  %v378_v44 = vadd.f32 %v366_v24, %v304_v35  ;;  %v601_v51 = vld [vmem:[#allocation2 + $0x340] sm:$0xff]  ;;  %v390_v35 = vld [vmem:[#allocation2 + $0x218] sm:$0xff] }
  0xa3   :  { %v1540_v3 = vpop.permute.xlu1 %135  ;;  %v1542_v4 = vpop.permute.xlu0 %73  ;;  %v379_v45 = vadd.f32 %v367_v25, %v305_v36  ;;  %v168_v50 = vadd.f32 %v156_v28, %v94_v33  ;;  %v315_v28 = vld [vmem:[#allocation2 + $0x1b0] sm:$0xff]  ;;  %v254_v33 = vld [vmem:[#allocation2 + $0x158] sm:$0xff] }
  0xa7   :  { %v1544_v6 = vpop.permute.xlu1 %283  ;;  %v1546_v7 = vpop.permute.xlu0 %214 }
  0xa8   :  { %v230_v46 = vmul.f32 %v1546_v7, %v181_v30  ;;  %v231_v60 = vmul.f32 %v1546_v7, %v182_v31  ;;  %v44_v30 = vld [vmem:[#allocation2 + $0x30] sm:$0xff]  ;;  %v45_v31 = vld [vmem:[#allocation2 + $0x38] sm:$0xff] }
  0xab   :  { %v1548_v21 = vpop.permute.xlu1 %424  ;;  %v1550_v22 = vpop.permute.xlu0 %345 }
  0xac   :  { %v440_v41 = vmul.f32 %v1548_v21, %v391_v26  ;;  %v441_v42 = vmul.f32 %v1548_v21, %v392_v27  ;;  %v169_v21 = vadd.f32 %v157_v29, %v95_v34  ;;  %v105_v26 = vld [vmem:[#allocation2 + $0x90] sm:$0xff]  ;;  %v106_v27 = vld [vmem:[#allocation2 + $0x98] sm:$0xff] }
  0xad   :  { %v316_v29 = vld [vmem:[#allocation2 + $0x1b8] sm:$0xff]  ;;  %v389_v34 = vld [vmem:[#allocation2 + $0x210] sm:$0xff] }
  0xaf   :  { %v1552_v39 = vpop.permute.xlu1 %560  ;;  %v1554_v40 = vpop.permute.xlu0 %498 }
  0xb0   :  { %v577_v61 = vmul.f32 %v1552_v39, %v528_v37  ;;  %v515_v49 = vmul.f32 %v1554_v40, %v466_v38  ;;  %v364_v38 = vmul.f32 %v1550_v22, %v315_v28 }
  0xb2   :  { %v589_v7 = vadd.f32 %v577_v61, %v515_v49  ;;  %v525_v61 = vld [vmem:[#allocation2 + $0x2d0] sm:$0xff] }
  0xb3   :  { %v640_v53 = vpop.permute.xlu0 %639  ;;  %v1556_v54 = vpop.permute.xlu1 %68 }
  0xb4   :  { %v652_v57 = vmul.f32 %v640_v53, %v603_v47  ;;  %v653_v58 = vmul.f32 %v640_v53, %v604_v48  ;;  %v576_v47 = vmul.f32 %v1552_v39, %v527_v32  ;;  %v514_v48 = vmul.f32 %v1554_v40, %v465_v0  ;;  %v253_v32 = vld [vmem:[#allocation2 + $0x150] sm:$0xff] }
  0xb5   :  { %v452_v53 = vadd.f32 %v440_v41, %v378_v44  ;;  %v365_v41 = vmul.f32 %v1550_v22, %v316_v29  ;;  %v180_v44 = vld [vmem:[#allocation2 + $0xf8] sm:$0xff]  ;;  %v302_v49 = vmul.f32 %v1544_v6, %v253_v32  ;;  %v251_v32 = vld [vmem:[#allocation2 + $0x140] sm:$0xff] }
  0xb6   :  { %v664_v1 = vadd.f32 %v652_v57, %v590_v55  ;;  %v665_v5 = vadd.f32 %v653_v58, %v591_v56  ;;  %v453_v55 = vadd.f32 %v441_v42, %v379_v45  ;;  %v242_v58 = vadd.f32 %v230_v46, %v168_v50  ;;  %v179_v42 = vld [vmem:[#allocation2 + $0xf0] sm:$0xff] }
  0xb7   :  { %v1558_v2 = vpop.permute.xlu0 %130  ;;  %v1560_v8 = vpop.permute.xlu1 %209  ;;  %v154_v45 = vmul.f32 %v1540_v3, %v105_v26  ;;  %v155_v46 = vmul.f32 %v1540_v3, %v106_v27  ;;  %v303_v50 = vmul.f32 %v1544_v6, %v254_v33  ;;  %v463_v3 = vld [vmem:[#allocation2 + $0x270] sm:$0xff]  ;;  %v43_v26 = vld [vmem:[#allocation2 + $0x28] sm:$0xff]  ;;  %v103_v27 = vld [vmem:[#allocation2 + $0x80] sm:$0xff] }
  0xb8   :  { %v1562_v9 = vadd.f32 %v676_v62, %v664_v1  ;;  %v1564_v10 = vadd.f32 %v677_v63, %v665_v5  ;;  %v243_v62 = vadd.f32 %v231_v60, %v169_v21  ;;  %v588_v63 = vadd.f32 %v576_v47, %v514_v48  ;;  %v526_v48 = vld [vmem:[#allocation2 + $0x2d8] sm:$0xff]  ;;  %v252_v33 = vld [vmem:[#allocation2 + $0x148] sm:$0xff] }
  0xb9   :  { %v674_v11 = vadd.f32 %v452_v53, %v242_v58  ;;  %v92_v60 = vmul.f32 %v1542_v4, %v44_v30  ;;  %v93_v47 = vmul.f32 %v1542_v4, %v45_v31  ;;  %v464_v53 = vld [vmem:[#allocation2 + $0x278] sm:$0xff]  ;;  %v377_v58 = vadd.f32 %v365_v41, %v303_v50  ;;  %v104_v31 = vld [vmem:[#allocation2 + $0x88] sm:$0xff] }
  0xba   :  { %v705_v16 = vadd.f32 %v1564_v10, %v1562_v9  ;;  %v675_v39 = vadd.f32 %v453_v55, %v243_v62  ;;  %v41_v50 = vld [vmem:[#allocation2 + $0x18] sm:$0xff] }
  0xbb   :  { %v1568_v20 = vpop.permute.xlu0 %278  ;;  %v1570_v23 = vpop.permute.xlu1 %340  ;;  %v167_v6 = vadd.f32 %v155_v46, %v93_v47  ;;  %v101_v46 = vld [vmem:[#allocation2 + $0x70] sm:$0xff] }
  0xbc   :  { %706 = vadd.xlane.f32.xlu0 %v705_v16 }
  0xbf   :  { %v1582_v43 = vpop.permute.xlu0 %419  ;;  %v1584_v59 = vpop.permute.xlu1 %493 }
  0xc0   :  { %v438_v21 = vmul.f32 %v1582_v43, %v389_v34  ;;  %v439_v22 = vmul.f32 %v1582_v43, %v390_v35  ;;  %v313_v34 = vld [vmem:[#allocation2 + $0x1a0] sm:$0xff] }
  0xc2   :  { %v451_v43 = vadd.f32 %v439_v22, %v377_v58  ;;  %v387_v58 = vld [vmem:[#allocation2 + $0x200] sm:$0xff] }
  0xc3   :  { %v556_v56 = vpop.permute.xlu0 %555  ;;  %v635_v57 = vpop.permute.xlu1 %634 }
  0xc4   :  { %v650_v1 = vmul.f32 %v635_v57, %v601_v51  ;;  %v651_v5 = vmul.f32 %v635_v57, %v602_v52  ;;  %v228_v51 = vmul.f32 %v1560_v8, %v179_v42  ;;  %v229_v52 = vmul.f32 %v1560_v8, %v180_v44 }
  0xc5   :  { %v376_v57 = vadd.f32 %v364_v38, %v302_v49  ;;  %v574_v62 = vmul.f32 %v556_v56, %v525_v61  ;;  %v513_v8 = vmul.f32 %v1584_v59, %v464_v53  ;;  %v91_v42 = vmul.f32 %v1556_v54, %v43_v26  ;;  %v40_v49 = vld [vmem:[#allocation2 + $0x10] sm:$0xff] }
  0xc6   :  { %v662_v12 = vadd.f32 %v650_v1, %v588_v63  ;;  %v663_v13 = vadd.f32 %v651_v5, %v589_v7  ;;  %v575_v63 = vmul.f32 %v556_v56, %v526_v48  ;;  %v166_v7 = vadd.f32 %v154_v45, %v92_v60  ;;  %v599_v1 = vld [vmem:[#allocation2 + $0x330] sm:$0xff]  ;;  %v600_v5 = vld [vmem:[#allocation2 + $0x338] sm:$0xff]  ;;  %v314_v45 = vld [vmem:[#allocation2 + $0x1a8] sm:$0xff] }
  0xc7   :  { %v1592_v14 = vpop.permute.xlu1 %125  ;;  %v1594_v40 = vpop.permute.xlu0 %63  ;;  %v152_v44 = vmul.f32 %v1558_v2, %v103_v27  ;;  %v102_v60 = vld [vmem:[#allocation2 + $0x78] sm:$0xff]  ;;  %v153_v48 = vmul.f32 %v1558_v2, %v104_v31  ;;  %v362_v53 = vmul.f32 %v1570_v23, %v313_v34  ;;  %v719_v2 = vmul.f32 %v1564_v10, %v1564_v10 }
  0xc8   :  { %v1596_v15 = vadd.f32 %v674_v11, %v662_v12  ;;  %v1598_v16 = vadd.f32 %v675_v39, %v663_v13  ;;  %v450_v11 = vadd.f32 %v438_v21, %v376_v57  ;;  %v512_v39 = vmul.f32 %v1584_v59, %v463_v3  ;;  %v177_v21 = vld [vmem:[#allocation2 + $0xe0] sm:$0xff]  ;;  %v178_v57 = vld [vmem:[#allocation2 + $0xe8] sm:$0xff] }
  0xc9   :  { %v240_v12 = vadd.f32 %v228_v51, %v166_v7  ;;  %v241_v13 = vadd.f32 %v229_v52, %v167_v6  ;;  %v587_v56 = vadd.f32 %v575_v63, %v513_v8  ;;  %v300_v52 = vmul.f32 %v1568_v20, %v251_v32 }
  0xca   :  { %v702_v19 = vadd.f32 %v1598_v16, %v1596_v15  ;;  %v716_v24 = vmul.f32 %v1596_v15, %v1596_v15  ;;  %v717_v25 = vmul.f32 %v1598_v16, %v1598_v16  ;;  %v586_v28 = vadd.f32 %v574_v62, %v512_v39  ;;  %v388_v62 = vld [vmem:[#allocation2 + $0x208] sm:$0xff]  ;;  %v312_v39 = vld [vmem:[#allocation2 + $0x198] sm:$0xff] }
  0xcb   :  { %v1600_v17 = vpop.permute.xlu1 %273  ;;  %v1602_v18 = vpop.permute.xlu0 %204  ;;  %v672_v35 = vadd.f32 %v450_v11, %v240_v12  ;;  %v301_v3 = vmul.f32 %v1568_v20, %v252_v33  ;;  %v363_v63 = vmul.f32 %v1570_v23, %v314_v45  ;;  %v150_v7 = vmul.f32 %v1592_v14, %v101_v46  ;;  %v100_v46 = vld [vmem:[#allocation2 + $0x68] sm:$0xff] }
  0xcc   :  { %703 = vadd.xlane.f32.xlu1 %v702_v19  ;;  %v732_v0 = vadd.f32 %v717_v25, %v716_v24  ;;  %v42_v25 = vld [vmem:[#allocation2 + $0x20] sm:$0xff]  ;;  %v151_v20 = vmul.f32 %v1592_v14, %v102_v60  ;;  %v89_v11 = vmul.f32 %v1594_v40, %v41_v50  ;;  %v227_v26 = vmul.f32 %v1602_v18, %v178_v57 }
  0xcd   :  { %v90_v41 = vmul.f32 %v1556_v54, %v42_v25  ;;  %v718_v54 = vmul.f32 %v1562_v9, %v1562_v9  ;;  %v226_v25 = vmul.f32 %v1602_v18, %v177_v21  ;;  %v374_v32 = vadd.f32 %v362_v53, %v300_v52  ;;  %v38_v18 = vld [vmem:[#allocation2] sm:$0xff]  ;;  %v176_v52 = vld [vmem:[#allocation2 + $0xd8] sm:$0xff] }
  0xce   :  { %v375_v33 = vadd.f32 %v363_v63, %v301_v3  ;;  %v163_v45 = vadd.f32 %v151_v20, %v89_v11  ;;  %v247_v3 = vld [vmem:[#allocation2 + $0x120] sm:$0xff]  ;;  %v310_v63 = vld [vmem:[#allocation2 + $0x188] sm:$0xff] }
  0xcf   :  { %v1610_v36 = vpop.permute.xlu1 %414  ;;  %v1612_v37 = vpop.permute.xlu0 %335  ;;  %v735_v31 = vadd.f32 %v719_v2, %v718_v54  ;;  %v175_v54 = vld [vmem:[#allocation2 + $0xd0] sm:$0xff]  ;;  %v309_v2 = vld [vmem:[#allocation2 + $0x180] sm:$0xff]  ;;  %v598_v11 = vld [vmem:[#allocation2 + $0x328] sm:$0xff] }
  0xd0   :  { %733 = vadd.xlane.f32.xlu1 %v732_v0  ;;  %v673_v0 = vadd.f32 %v451_v43, %v241_v13  ;;  %v311_v43 = vld [vmem:[#allocation2 + $0x190] sm:$0xff]  ;;  %v436_v27 = vmul.f32 %v1610_v36, %v387_v58  ;;  %v437_v14 = vmul.f32 %v1610_v36, %v388_v62  ;;  %v248_v62 = vld [vmem:[#allocation2 + $0x128] sm:$0xff] }
  0xd1   :  { %v249_v13 = vld [vmem:[#allocation2 + $0x130] sm:$0xff]  ;;  %v360_v34 = vmul.f32 %v1612_v37, %v311_v43 }
  0xd2   :  { %v298_v36 = vmul.f32 %v1600_v17, %v249_v13  ;;  %v448_v21 = vadd.f32 %v436_v27, %v374_v32 }
  0xd3   :  { %v1626_v55 = vpop.permute.xlu1 %550  ;;  %v1628_v4 = vpop.permute.xlu0 %488 }
  0xd7   :  { %v630_v19 = vpop.permute.xlu0 %629  ;;  %v1632_v24 = vpop.permute.xlu1 %58 }
  0xd8   :  { %v648_v29 = vmul.f32 %v630_v19, %v599_v1  ;;  %v649_v30 = vmul.f32 %v630_v19, %v600_v5  ;;  %v88_v5 = vmul.f32 %v1594_v40, %v40_v49  ;;  %v250_v19 = vld [vmem:[#allocation2 + $0x138] sm:$0xff]  ;;  %v165_v40 = vadd.f32 %v153_v48, %v91_v42  ;;  %v39_v42 = vld [vmem:[#allocation2 + $0x8] sm:$0xff] }
  0xd9   :  { %v86_v43 = vmul.f32 %v1632_v24, %v38_v18 }
  0xda   :  { %v660_v38 = vadd.f32 %v648_v29, %v586_v28  ;;  %v661_v59 = vadd.f32 %v649_v30, %v587_v56  ;;  %v164_v28 = vadd.f32 %v152_v44, %v90_v41  ;;  %v523_v56 = vld [vmem:[#allocation2 + $0x2c0] sm:$0xff]  ;;  %v524_v29 = vld [vmem:[#allocation2 + $0x2c8] sm:$0xff]  ;;  %v299_v41 = vmul.f32 %v1600_v17, %v250_v19 }
  0xdb   :  { %v1637_v47 = vpop.permute.xlu0 %120  ;;  %v1639_v61 = vpop.permute.xlu1 %199  ;;  %v99_v44 = vld [vmem:[#allocation2 + $0x60] sm:$0xff]  ;;  %v239_v50 = vadd.f32 %v227_v26, %v165_v40  ;;  %v572_v53 = vmul.f32 %v1626_v55, %v523_v56  ;;  %v573_v57 = vmul.f32 %v1626_v55, %v524_v29  ;;  %v87_v55 = vmul.f32 %v1632_v24, %v39_v42  ;;  %v385_v40 = vld [vmem:[#allocation2 + $0x1f0] sm:$0xff] }
  0xdc   :  { %v1642_v22 = vadd.f32 %v672_v35, %v660_v38  ;;  %v1644_v51 = vadd.f32 %v673_v0, %v661_v59  ;;  %v361_v35 = vmul.f32 %v1612_v37, %v312_v39  ;;  %v461_v0 = vld [vmem:[#allocation2 + $0x260] sm:$0xff]  ;;  %v462_v38 = vld [vmem:[#allocation2 + $0x268] sm:$0xff]  ;;  %v162_v59 = vadd.f32 %v150_v7, %v88_v5 }
  0xdd   :  { %v238_v49 = vadd.f32 %v226_v25, %v164_v28  ;;  %v449_v37 = vadd.f32 %v437_v14, %v375_v33  ;;  %v510_v17 = vmul.f32 %v1628_v4, %v461_v0  ;;  %v511_v58 = vmul.f32 %v1628_v4, %v462_v38  ;;  %v597_v5 = vld [vmem:[#allocation2 + $0x320] sm:$0xff]  ;;  %v459_v33 = vld [vmem:[#allocation2 + $0x250] sm:$0xff] }
  0xde   :  { %v699_v6 = vadd.f32 %v1644_v51, %v1642_v22  ;;  %v714_v1 = vmul.f32 %v1642_v22, %v1642_v22  ;;  %v715_v23 = vmul.f32 %v1644_v51, %v1644_v51  ;;  %v372_v7 = vadd.f32 %v360_v34, %v298_v36  ;;  %v521_v34 = vld [vmem:[#allocation2 + $0x2b0] sm:$0xff]  ;;  %v174_v36 = vld [vmem:[#allocation2 + $0xc8] sm:$0xff] }
  0xdf   :  { %v269_v8 = vpop.permute.xlu0 %268  ;;  %v331_v12 = vpop.permute.xlu1 %330  ;;  %v149_v20 = vmul.f32 %v1637_v47, %v100_v46  ;;  %v224_v39 = vmul.f32 %v1639_v61, %v175_v54  ;;  %v225_v4 = vmul.f32 %v1639_v61, %v176_v52  ;;  %v584_v14 = vadd.f32 %v572_v53, %v510_v17  ;;  %v458_v53 = vld [vmem:[#allocation2 + $0x248] sm:$0xff] }
  0xe0   :  { %700 = vadd.xlane.f32.xlu0 %v699_v6  ;;  %v729_v30 = vadd.f32 %v715_v23, %v714_v1  ;;  %v1678_v6 = vadd.f32 %v361_v35, %v299_v41  ;;  %v148_v1 = vmul.f32 %v1637_v47, %v99_v44  ;;  %v296_v19 = vmul.f32 %v269_v8, %v247_v3  ;;  %v386_v47 = vld [vmem:[#allocation2 + $0x1f8] sm:$0xff]  ;;  %v383_v41 = vld [vmem:[#allocation2 + $0x1e0] sm:$0xff] }
  0xe1   :  { %v297_v25 = vmul.f32 %v269_v8, %v248_v62  ;;  %v358_v26 = vmul.f32 %v331_v12, %v309_v2  ;;  %v359_v27 = vmul.f32 %v331_v12, %v310_v63  ;;  %v585_v28 = vadd.f32 %v573_v57, %v511_v58  ;;  %v522_v35 = vld [vmem:[#allocation2 + $0x2b8] sm:$0xff]  ;;  %v173_v8 = vld [vmem:[#allocation2 + $0xc0] sm:$0xff]  ;;  %v520_v63 = vld [vmem:[#allocation2 + $0x2a8] sm:$0xff] }
  0xe2   :  { %730 = vadd.xlane.f32.xlu1 %v729_v30  ;;  %v670_v30 = vadd.f32 %v448_v21, %v238_v49  ;;  %v160_v32 = vadd.f32 %v148_v1, %v86_v43  ;;  %v161_v24 = vadd.f32 %v149_v20, %v87_v55  ;;  %v236_v61 = vadd.f32 %v224_v39, %v162_v59  ;;  %v384_v49 = vld [vmem:[#allocation2 + $0x1e8] sm:$0xff]  ;;  %v519_v2 = vld [vmem:[#allocation2 + $0x2a0] sm:$0xff] }
  0xe3   :  { %v410_v60 = vpop.permute.xlu0 %409  ;;  %v1672_v48 = vpop.permute.xlu1 %483  ;;  %v237_v0 = vadd.f32 %v225_v4, %v163_v45  ;;  %v370_v44 = vadd.f32 %v358_v26, %v296_v19  ;;  %v371_v46 = vadd.f32 %v359_v27, %v297_v25  ;;  %v457_v45 = vld [vmem:[#allocation2 + $0x240] sm:$0xff] }
  0xe4   :  { %736 = vadd.xlane.f32.xlu0 %v735_v31  ;;  %v671_v31 = vadd.f32 %v449_v37, %v239_v50  ;;  %v434_v54 = vmul.f32 %v410_v60, %v385_v40  ;;  %v435_v52 = vmul.f32 %v410_v60, %v386_v47  ;;  %v460_v50 = vld [vmem:[#allocation2 + $0x258] sm:$0xff]  ;;  %v508_v21 = vmul.f32 %v1672_v48, %v459_v33  ;;  %v594_v40 = vld [vmem:[#allocation2 + $0x308] sm:$0xff] }
  0xe5   :  { %v509_v39 = vmul.f32 %v1672_v48, %v460_v50 }
  0xe6   :  { %v446_v55 = vadd.f32 %v434_v54, %v372_v7  ;;  %v447_v19 = vadd.f32 %v435_v52, %v1678_v6 }
  0xe7   :  { %v546_v23 = vpop.permute.xlu0 %545  ;;  %v625_v13 = vpop.permute.xlu1 %624 }
  0xe8   :  { %v646_v56 = vmul.f32 %v625_v13, %v597_v5  ;;  %v647_v29 = vmul.f32 %v625_v13, %v598_v11  ;;  %v570_v37 = vmul.f32 %v546_v23, %v521_v34  ;;  %v571_v57 = vmul.f32 %v546_v23, %v522_v35  ;;  %v595_v13 = vld [vmem:[#allocation2 + $0x310] sm:$0xff] }
  0xea   :  { %v658_v38 = vadd.f32 %v646_v56, %v584_v14  ;;  %v659_v18 = vadd.f32 %v647_v29, %v585_v28  ;;  %v596_v14 = vld [vmem:[#allocation2 + $0x318] sm:$0xff]  ;;  %v593_v28 = vld [vmem:[#allocation2 + $0x300] sm:$0xff]  ;;  %v582_v47 = vadd.f32 %v570_v37, %v508_v21  ;;  %v583_v56 = vadd.f32 %v571_v57, %v509_v39 }
  0xeb   :  { %v195_v12 = vpop.permute.xlu0 %194  ;;  %v405_v42 = vpop.permute.xlu1 %404 }
  0xec   :  { %v1687_v3 = vadd.f32 %v670_v30, %v658_v38  ;;  %v1689_v59 = vadd.f32 %v671_v31, %v659_v18  ;;  %v222_v17 = vmul.f32 %v195_v12, %v173_v8  ;;  %v223_v58 = vmul.f32 %v195_v12, %v174_v36 }
  0xed   :  { %v432_v62 = vmul.f32 %v405_v42, %v383_v41  ;;  %v433_v1 = vmul.f32 %v405_v42, %v384_v49  ;;  %v668_v36 = vadd.f32 %v446_v55, %v236_v61  ;;  %v669_v12 = vadd.f32 %v447_v19, %v237_v0 }
  0xee   :  { %v696_v5 = vadd.f32 %v1689_v59, %v1687_v3  ;;  %v712_v11 = vmul.f32 %v1687_v3, %v1687_v3  ;;  %v713_v43 = vmul.f32 %v1689_v59, %v1689_v59  ;;  %v234_v29 = vadd.f32 %v222_v17, %v160_v32 }
  0xef   :  { %v479_v20 = vpop.permute.xlu0 %478  ;;  %v541_v60 = vpop.permute.xlu1 %540  ;;  %v235_v30 = vadd.f32 %v223_v58, %v161_v24  ;;  %v444_v31 = vadd.f32 %v432_v62, %v370_v44  ;;  %v445_v7 = vadd.f32 %v433_v1, %v371_v46 }
  0xf0   :  { %v506_v4 = vmul.f32 %v479_v20, %v457_v45  ;;  %v507_v23 = vmul.f32 %v479_v20, %v458_v53  ;;  %v568_v25 = vmul.f32 %v541_v60, %v519_v2  ;;  %v569_v26 = vmul.f32 %v541_v60, %v520_v63  ;;  %697 = vadd.xlane.f32.xlu0 %v696_v5 }
  0xf1   :  { %v726_v27 = vadd.f32 %v713_v43, %v712_v11  ;;  %v666_v49 = vadd.f32 %v444_v31, %v234_v29  ;;  %v667_v32 = vadd.f32 %v445_v7, %v235_v30 }
  0xf2   :  { %v580_v33 = vadd.f32 %v568_v25, %v506_v4  ;;  %v581_v48 = vadd.f32 %v569_v26, %v507_v23  ;;  %v766_v23 = vld [vmem:[%s1925_s2 + $0x20] sm:$0xff] }
  0xf3   :  { %727 = vadd.xlane.f32.xlu1 %v726_v27  ;;  %v620_v34 = vpop.permute.xlu0 %619  ;;  %v615_v35 = vpop.permute.xlu1 %614 }
  0xf4   :  { %v644_v38 = vmul.f32 %v620_v34, %v595_v13  ;;  %v645_v6 = vmul.f32 %v620_v34, %v596_v14  ;;  %v642_v18 = vmul.f32 %v615_v35, %v593_v28  ;;  %v643_v8 = vmul.f32 %v615_v35, %v594_v40  ;;  %v767_v34 = vld [vmem:[%s1925_s2 + $0x28] sm:$0xff] }
  0xf6   :  { %v656_v41 = vadd.f32 %v644_v38, %v582_v47  ;;  %v657_v42 = vadd.f32 %v645_v6, %v583_v56  ;;  %v654_v54 = vadd.f32 %v642_v18, %v580_v33  ;;  %v655_v52 = vadd.f32 %v643_v8, %v581_v48  ;;  %v765_v8 = vld [vmem:[%s1925_s2 + $0x18] sm:$0xff] }
  0xf8   :  { %v1699_v24 = vadd.f32 %v668_v36, %v656_v41  ;;  %v1701_v44 = vadd.f32 %v669_v12, %v657_v42  ;;  %v1703_v46 = vadd.f32 %v666_v49, %v654_v54  ;;  %v1705_v50 = vadd.f32 %v667_v32, %v655_v52 }
  0xfa   :  { %v693_v21 = vadd.f32 %v1701_v44, %v1699_v24  ;;  %v710_v61 = vmul.f32 %v1699_v24, %v1699_v24  ;;  %v711_v0 = vmul.f32 %v1701_v44, %v1701_v44  ;;  %v690_v45 = vadd.f32 %v1705_v50, %v1703_v46 }
  0xfb   :  { %v708_v53 = vmul.f32 %v1703_v46, %v1703_v46  ;;  %v709_v57 = vmul.f32 %v1705_v50, %v1705_v50 }
  0xfc   :  { %694 = vadd.xlane.f32.xlu0 %v693_v21  ;;  %v723_v37 = vadd.f32 %v711_v0, %v710_v61 }
  0xfd   :  { %v720_v17 = vadd.f32 %v709_v57, %v708_v53  ;;  %v764_v53 = vld [vmem:[%s1925_s2 + $0x10] sm:$0xff] }
  0xfe   :  { %724 = vadd.xlane.f32.xlu1 %v723_v37 }
 0x100   :  { %691 = vadd.xlane.f32.xlu0 %v690_v45 }
 0x104   :  { %721 = vadd.xlane.f32.xlu0 %v720_v17 }
 0x145   :  { %v707_v5 = vpop.xlane.xlu0 %706 }
 0x146   :  { %v743_v43 = vmul.f32 0.0051020407, %v707_v5 }
 0x148   :  { %v755_v26 = vmul.f32 %v743_v43, %v743_v43 }
 0x155   :  { %v704_v58 = vpop.xlane.xlu1 %703 }
 0x156   :  { %v742_v62 = vmul.f32 0.0051020407, %v704_v58 }
 0x158   :  { %v754_v63 = vmul.f32 %v742_v62, %v742_v62 }
 0x159   :  { %v734_v2 = vpop.xlane.xlu1 %733 }
 0x15a   :  { %v748_v1 = vmul.f32 0.0051020407, %v734_v2  ;;  %v763_v2 = vld [vmem:[%s1925_s2 + $0x8] sm:$0xff] }
 0x15c   :  { %v760_v20 = vsub.f32 %v748_v1, %v754_v63 }
 0x15e   :  { %v772_v60 = vadd.f32 1e-05, %v760_v20  ;;  %v762_v20 = vld [vmem:[%s1925_s2] sm:$0xff] }
 0x160   :  { %1255 = vrsqrt.f32 %v772_v60 }
 0x169   :  { %v701_v11 = vpop.xlane.xlu0 %700 }
 0x16a   :  { %v741_v55 = vmul.f32 0.0051020407, %v701_v11  ;;  %v1327_v11 = vmov 0.0  }
 0x16b   :  { %v731_v4 = vpop.xlane.xlu1 %730  ;;  %917 = vmatprep.mubr.f32.mxu0 %v1327_v11  ;;  %935 = vmatprep.mubr.f32.mxu1 %v1327_v11 }
 0x16c   :  { %v753_v39 = vmul.f32 %v741_v55, %v741_v55  ;;  %v747_v13 = vmul.f32 0.0051020407, %v731_v4 }
 0x16d   :  { %v737_v19 = vpop.xlane.xlu0 %736  ;;  %v1256_v25 = vpop.eup %1255 }
 0x16e   :  { %v749_v27 = vmul.f32 0.0051020407, %v737_v19  ;;  %v759_v14 = vsub.f32 %v747_v13, %v753_v39  ;;  %v784_v28 = vmul.f32 %v1256_v25, %v766_v23 }
 0x170   :  { %v761_v40 = vsub.f32 %v749_v27, %v755_v26  ;;  %808 = vperm.xlu0 %1253, %v784_v28   ;;  %v771_v47 = vadd.f32 1e-05, %v759_v14  ;;  %v833_v28 = vld [vmem:[%s1926_s3 + $0x28] sm:$0xff] }
 0x172   :  { %v773_v56 = vadd.f32 1e-05, %v761_v40 }
 0x174   :  { %1257 = vrsqrt.f32 %v773_v56 }
 0x175   :  { %1259 = vrsqrt.f32 %v771_v47 }
 0x179   :  { %v698_v29 = vpop.xlane.xlu0 %697 }
 0x17a   :  { %v740_v30 = vmul.f32 0.0051020407, %v698_v29 }
 0x17c   :  { %v728_v31 = vpop.xlane.xlu1 %727  ;;  %v752_v7 = vmul.f32 %v740_v30, %v740_v30 }
 0x17d   :  { %v746_v33 = vmul.f32 0.0051020407, %v728_v31 }
 0x17f   :  { %v758_v48 = vsub.f32 %v746_v33, %v752_v7 }
 0x181   :  { %v1258_v35 = vpop.eup %1257  ;;  %v770_v38 = vadd.f32 1e-05, %v758_v48 }
 0x182   :  { %v785_v6 = vmul.f32 %v1258_v35, %v767_v34  ;;  %v1260_v18 = vpop.eup %1259 }
 0x183   :  { %1261 = vrsqrt.f32 %v770_v38  ;;  %v783_v41 = vmul.f32 %v1260_v18, %v765_v8 }
 0x184   :  { %813 = vperm.xlu1 %1254, %v785_v6  }
 0x185   :  { %v695_v36 = vpop.xlane.xlu0 %694 }
 0x186   :  { %v739_v12 = vmul.f32 0.0051020407, %v695_v36 }
 0x187   :  { %v725_v42 = vpop.xlane.xlu1 %724 }
 0x188   :  { %v751_v54 = vmul.f32 %v739_v12, %v739_v12  ;;  %v745_v52 = vmul.f32 0.0051020407, %v725_v42  ;;  %803 = vperm.xlu1 %1254, %v783_v41  }
 0x189   :  { %v692_v49 = vpop.xlane.xlu0 %691 }
 0x18a   :  { %v757_v32 = vsub.f32 %v745_v52, %v751_v54  ;;  %v738_v21 = vmul.f32 0.0051020407, %v692_v49 }
 0x18c   :  { %v769_v61 = vadd.f32 1e-05, %v757_v32  ;;  %v750_v37 = vmul.f32 %v738_v21, %v738_v21 }
 0x18d   :  { %v722_v0 = vpop.xlane.xlu0 %721 }
 0x18e   :  { %1263 = vrsqrt.f32 %v769_v61  ;;  %v744_v45 = vmul.f32 0.0051020407, %v722_v0 }
 0x190   :  { %v1262_v57 = vpop.eup %1261  ;;  %v756_v17 = vsub.f32 %v744_v45, %v750_v37 }
 0x191   :  { %v782_v58 = vmul.f32 %v1262_v57, %v764_v53 }
 0x192   :  { %v768_v62 = vadd.f32 1e-05, %v756_v17 }
 0x193   :  { %798 = vperm.xlu1 %1254, %v782_v58  }
 0x194   :  { %1265 = vrsqrt.f32 %v768_v62 }
 0x19b   :  { %v1264_v63 = vpop.eup %1263 }
 0x19c   :  { %v781_v1 = vmul.f32 %v1264_v63, %v763_v2 }
 0x19e   :  { %793 = vperm.xlu0 %1253, %v781_v1  }
 0x1a1   :  { %v1266_v60 = vpop.eup %1265 }
 0x1a2   :  { %v780_v5 = vmul.f32 %v1266_v60, %v762_v20  ;;  %v1105_v20 = vld [vmem:[%s1928_s5 + $0x8] sm:$0xff]  ;;  %v1107_v60 = vld [vmem:[%s1928_s5 + $0x18] sm:$0xff] }
 0x1a4   :  { %788 = vperm.xlu1 %1254, %v780_v5   ;;  %v1104_v5 = vld [vmem:[%s1928_s5] sm:$0xff] }
 0x1eb   :  { %v809_v43 = vpop.permute.xlu0 %808 }
 0x1ec   :  { %v825_v23 = vmul.f32 %v809_v43, %v1598_v16  ;;  %v824_v13 = vmul.f32 %v809_v43, %v1596_v15 }
 0x1ff   :  { %v814_v55 = vpop.permute.xlu1 %813 }
 0x200   :  { %v827_v39 = vmul.f32 %v814_v55, %v1564_v10  ;;  %v826_v4 = vmul.f32 %v814_v55, %v1562_v9 }
 0x202   :  { %873 = vmatprep.subr.mxu0 %v827_v39  ;;  %1235 = vmatprep.subr.mxu1 %v827_v39 }
 0x203   :  { %874 = vmatpush1.msra.mxu0 %v826_v4  ;;  %1241 = vmatpush1.msra.mxu1 %v826_v4  ;;  %v804_v19 = vpop.permute.xlu1 %803 }
 0x204   :  { %v822_v25 = vmul.f32 %v804_v19, %v1642_v22  ;;  %v823_v26 = vmul.f32 %v804_v19, %v1644_v51  ;;  %875 = vmatprep.subr.mxu0 %v825_v23  ;;  %1236 = vmatprep.subr.mxu1 %v825_v23 }
 0x205   :  { %876 = vmatpush1.msra.mxu0 %v824_v13  ;;  %1242 = vmatpush1.msra.mxu1 %v824_v13 }
 0x206   :  { %877 = vmatprep.subr.mxu0 %v823_v26  ;;  %1237 = vmatprep.subr.mxu1 %v823_v26 }
 0x207   :  { %878 = vmatpush1.msra.mxu0 %v822_v25  ;;  %1243 = vmatpush1.msra.mxu1 %v822_v25 }
 0x20e   :  { %v799_v9 = vpop.permute.xlu1 %798 }
 0x20f   :  { %v820_v10 = vmul.f32 %v799_v9, %v1687_v3  ;;  %v821_v15 = vmul.f32 %v799_v9, %v1689_v59  ;;  %v828_v59 = vld [vmem:[%s1926_s3] sm:$0xff] }
 0x211   :  { %879 = vmatprep.subr.mxu0 %v821_v15  ;;  %1238 = vmatprep.subr.mxu1 %v821_v15 }
 0x212   :  { %880 = vmatpush1.msra.mxu0 %v820_v10  ;;  %1244 = vmatpush1.msra.mxu1 %v820_v10 }
 0x219   :  { %v794_v16 = vpop.permute.xlu0 %793 }
 0x21a   :  { %v818_v22 = vmul.f32 %v794_v16, %v1699_v24  ;;  %v819_v51 = vmul.f32 %v794_v16, %v1701_v44  ;;  %v831_v24 = vld [vmem:[%s1926_s3 + $0x18] sm:$0xff]  ;;  %v829_v44 = vld [vmem:[%s1926_s3 + $0x8] sm:$0xff] }
 0x21c   :  { %881 = vmatprep.subr.mxu0 %v819_v51  ;;  %1239 = vmatprep.subr.mxu1 %v819_v51 }
 0x21d   :  { %882 = vmatpush1.msra.mxu0 %v818_v22  ;;  %1245 = vmatpush1.msra.mxu1 %v818_v22 }
 0x21f   :  { %v789_v27 = vpop.permute.xlu1 %788 }
 0x220   :  { %v816_v14 = vmul.f32 %v789_v27, %v1703_v46  ;;  %v817_v3 = vmul.f32 %v789_v27, %v1705_v50  ;;  %v832_v46 = vld [vmem:[%s1926_s3 + $0x20] sm:$0xff]  ;;  %v830_v50 = vld [vmem:[%s1926_s3 + $0x10] sm:$0xff] }
 0x222   :  { %883 = vmatprep.subr.mxu0 %v817_v3  ;;  %1240 = vmatprep.subr.mxu1 %v817_v3 }
 0x223   :  { %884 = vmatpush1.msra.mxu0 %v816_v14  ;;  %1246 = vmatpush1.msra.mxu1 %v816_v14 }
 0x224   :  { %1229 = vmatmul.mubr.msk.f32.vlgmr.msra.gmra.mxu0 %vm834_vm0, %v828_v59  ;;  %1232 = vmatmul.mubr.msk.f32.vlgmr.msra.gmra.mxu1 %vm834_vm0, %v831_v24 }
 0x225   :  { %923 = vmatprep.mubr.f32.mxu0 %v1327_v11  ;;  %941 = vmatprep.mubr.f32.mxu1 %v1327_v11 }
 0x228   :  { %1230 = vmatmul.mubr.msk.f32.gmra.mxu0 %vm834_vm0, %v829_v44  ;;  %1233 = vmatmul.mubr.msk.f32.gmra.mxu1 %vm834_vm0, %v832_v46 }
 0x229   :  { %929 = vmatprep.mubr.f32.mxu0 %v1327_v11  ;;  %947 = vmatprep.mubr.f32.mxu1 %v1327_v11  ;;  %v1106_v11 = vld [vmem:[%s1928_s5 + $0x10] sm:$0xff] }
 0x22c   :  { %1231 = vmatmul.mubr.msk.f32.gmra.mxu0 %vm834_vm0, %v830_v50  ;;  %1234 = vmatmul.mubr.msk.f32.gmra.mxu1 %vm834_vm0, %v833_v28 }
 0x2e4   :  { %v1773_v40 = vpop.f32.mrf.mxu0  ;;  %v1775_v47 = vpop.f32.mrf.mxu1 }
 0x2e5   :  { %v972_v31 = vmul.f32 %v1773_v40, %v1773_v40  ;;  %v978_v38 = vmul.f32 %v1775_v47, %v1775_v47 }
 0x2e6   :  { %v1777_v56 = vpop.f32.mrf.mxu0  ;;  %v1779_v29 = vpop.f32.mrf.mxu1 }
 0x2e7   :  { %v954_v30 = vadd.f32 %v1777_v56, %v1773_v40  ;;  %v973_v7 = vmul.f32 %v1777_v56, %v1777_v56  ;;  %v979_v6 = vmul.f32 %v1779_v29, %v1779_v29  ;;  %v963_v18 = vadd.f32 %v1779_v29, %v1775_v47 }
 0x2e8   :  { %v1787_v33 = vpop.f32.mrf.mxu0  ;;  %v1789_v48 = vpop.f32.mrf.mxu1 }
 0x2e9   :  { %955 = vadd.xlane.f32.xlu0 %v954_v30  ;;  %v984_v34 = vadd.f32 %v973_v7, %v972_v31  ;;  %v993_v41 = vadd.f32 %v979_v6, %v978_v38  ;;  %v974_v54 = vmul.f32 %v1787_v33, %v1787_v33  ;;  %v980_v45 = vmul.f32 %v1789_v48, %v1789_v48 }
 0x2ea   :  { %v1791_v35 = vpop.f32.mrf.mxu0  ;;  %v1803_v12 = vpop.f32.mrf.mxu1 }
 0x2eb   :  { %985 = vadd.xlane.f32.xlu1 %v984_v34  ;;  %v957_v8 = vadd.f32 %v1791_v35, %v1787_v33  ;;  %v966_v49 = vadd.f32 %v1803_v12, %v1789_v48  ;;  %v975_v32 = vmul.f32 %v1791_v35, %v1791_v35  ;;  %v981_v53 = vmul.f32 %v1803_v12, %v1803_v12 }
 0x2ec   :  { %v1801_v36 = vpop.f32.mrf.mxu0  ;;  %v1817_v37 = vpop.f32.mrf.mxu1 }
 0x2ed   :  { %964 = vadd.xlane.f32.xlu0 %v963_v18  ;;  %v976_v21 = vmul.f32 %v1801_v36, %v1801_v36  ;;  %v987_v61 = vadd.f32 %v975_v32, %v974_v54  ;;  %v996_v58 = vadd.f32 %v981_v53, %v980_v45  ;;  %v982_v63 = vmul.f32 %v1817_v37, %v1817_v37 }
 0x2ee   :  { %v1805_v42 = vpop.f32.mrf.mxu0  ;;  %v1825_v17 = vpop.f32.mrf.mxu1 }
 0x2ef   :  { %958 = vadd.xlane.f32.xlu1 %v957_v8  ;;  %v977_v52 = vmul.f32 %v1805_v42, %v1805_v42  ;;  %v960_v57 = vadd.f32 %v1805_v42, %v1801_v36  ;;  %v983_v62 = vmul.f32 %v1825_v17, %v1825_v17  ;;  %v969_v2 = vadd.f32 %v1825_v17, %v1817_v37 }
 0x2f1   :  { %994 = vadd.xlane.f32.xlu0 %v993_v41  ;;  %v990_v0 = vadd.f32 %v977_v52, %v976_v21  ;;  %v999_v1 = vadd.f32 %v983_v62, %v982_v63  ;;  %v1038_v41 = vld [vmem:[%s1927_s4] sm:$0xff] }
 0x2f3   :  { %967 = vadd.xlane.f32.xlu1 %v966_v49 }
 0x2f5   :  { %988 = vadd.xlane.f32.xlu0 %v987_v61 }
 0x2f7   :  { %991 = vadd.xlane.f32.xlu1 %v990_v0 }
 0x2f9   :  { %961 = vadd.xlane.f32.xlu0 %v960_v57 }
 0x2fb   :  { %997 = vadd.xlane.f32.xlu1 %v996_v58  ;;  %v1041_v58 = vld [vmem:[%s1927_s4 + $0x18] sm:$0xff] }
 0x2fd   :  { %970 = vadd.xlane.f32.xlu0 %v969_v2 }
 0x301   :  { %1000 = vadd.xlane.f32.xlu0 %v999_v1 }
 0x30c   :  { %1117 = vperm.xlu1 %1254, %v1105_v20   ;;  %v1039_v20 = vld [vmem:[%s1927_s4 + $0x8] sm:$0xff] }
 0x310   :  { %1127 = vperm.xlu1 %1254, %v1107_v60  }
 0x317   :  { %1112 = vperm.xlu0 %1253, %v1104_v5  }
 0x31b   :  { %1122 = vperm.xlu0 %1253, %v1106_v11   ;;  %v1040_v11 = vld [vmem:[%s1927_s4 + $0x10] sm:$0xff] }
 0x372   :  { %v956_v43 = vpop.xlane.xlu0 %955 }
 0x373   :  { %v1845_v55 = vmul.f32 0.0051020407, %v956_v43  ;;  %v1042_v43 = vld [vmem:[%s1927_s4 + $0x20] sm:$0xff] }
 0x374   :  { %v986_v39 = vpop.xlane.xlu1 %985 }
 0x375   :  { %v1008_v4 = vmul.f32 0.0051020407, %v986_v39  ;;  %v1014_v23 = vmul.f32 %v1845_v55, %v1845_v55 }
 0x376   :  { %v965_v13 = vpop.xlane.xlu0 %964 }
 0x377   :  { %v1020_v19 = vsub.f32 %v1008_v4, %v1014_v23  ;;  %v1849_v25 = vmul.f32 0.0051020407, %v965_v13 }
 0x378   :  { %v959_v26 = vpop.xlane.xlu1 %958 }
 0x379   :  { %v1044_v9 = vadd.f32 1e-05, %v1020_v19  ;;  %v1017_v15 = vmul.f32 %v1849_v25, %v1849_v25  ;;  %v1853_v51 = vmul.f32 0.0051020407, %v959_v26  ;;  %v1043_v19 = vld [vmem:[%s1927_s4 + $0x28] sm:$0xff]  ;;  %v1108_v26 = vld [vmem:[%s1928_s5 + $0x20] sm:$0xff] }
 0x37a   :  { %v995_v10 = vpop.xlane.xlu0 %994  ;;  %s1328_s4 = smov [#allocation5]  }
 0x37b   :  { %1267 = vrsqrt.f32 %v1044_v9  ;;  %v1011_v16 = vmul.f32 0.0051020407, %v995_v10  ;;  %v1015_v24 = vmul.f32 %v1853_v51, %v1853_v51 }
 0x37c   :  { %v968_v22 = vpop.xlane.xlu1 %967 }
 0x37d   :  { %v1023_v27 = vsub.f32 %v1011_v16, %v1017_v15  ;;  %v1857_v50 = vmul.f32 0.0051020407, %v968_v22  ;;  %v1109_v15 = vld [vmem:[%s1928_s5 + $0x28] sm:$0xff]  ;;  %s1169_s5 = sshll.u32 %s1328_s4, 4  ;;  %s1170_s5 = int_to_ptr.vmem [resolvable:$true] %s1169_s5 }
 0x37e   :  { %v989_v14 = vpop.xlane.xlu0 %988  ;;  %s1299_s16 = scalar_lea.vmem %s1170_s5, 1536  ;;  %p1304_p6 = scmp.lt.s32.totalorder %s1170_s5, %s1170_s5 }
 0x37f   :  { %v1047_v3 = vadd.f32 1e-05, %v1023_v27  ;;  %v1009_v59 = vmul.f32 0.0051020407, %v989_v14  ;;  %v1018_v7 = vmul.f32 %v1857_v50, %v1857_v50  ;;  %v1026_v27 = vsub.f32 %v1773_v40, %v1845_v55  ;;  %p1300_p5 = scmp.ne.s32.totalorder %s1170_s5, %s1299_s16  ;;  %p1305_p7 = scmp.lt.s32.totalorder %s1299_s16, %s1299_s16 }
 0x380   :  { %v992_v44 = vpop.xlane.xlu1 %991  ;;  %v1027_v14 = vsub.f32 %v1777_v56, %v1845_v55  ;;  %v1028_v55 = vsub.f32 %v1787_v33, %v1853_v51 }
 0x381   :  { %1269 = vrsqrt.f32 %v1047_v3  ;;  %v1021_v46 = vsub.f32 %v1009_v59, %v1015_v24  ;;  %v1010_v38 = vmul.f32 0.0051020407, %v992_v44  ;;  %p1306_p8 = por %p1305_p7, %p1304_p6 }
 0x382   :  { %v962_v28 = vpop.xlane.xlu0 %961 }
 0x383   :  { %v1045_v30 = vadd.f32 1e-05, %v1021_v46  ;;  %v1859_v31 = vmul.f32 0.0051020407, %v962_v28  ;;  %p1307_p9 = pnand %p1306_p8, %p1300_p5 }
 0x384   :  { %v998_v34 = vpop.xlane.xlu1 %997 }
 0x385   :  { %1271 = vrsqrt.f32 %v1045_v30  ;;  %v1016_v6 = vmul.f32 %v1859_v31, %v1859_v31  ;;  %v1012_v18 = vmul.f32 0.0051020407, %v998_v34  ;;  %v1032_v30 = vsub.f32 %v1775_v47, %v1849_v25 }
 0x386   :  { %v971_v8 = vpop.xlane.xlu0 %970 }
 0x387   :  { %v1022_v54 = vsub.f32 %v1010_v38, %v1016_v6  ;;  %v1024_v52 = vsub.f32 %v1012_v18, %v1018_v7  ;;  %v1868_v49 = vmul.f32 0.0051020407, %v971_v8  ;;  %v1033_v7 = vsub.f32 %v1779_v29, %v1849_v25 }
 0x388   :  { %v1268_v32 = vpop.eup %1267  ;;  %v1118_v16 = vpop.permute.xlu1 %1117  ;;  %v1029_v8 = vsub.f32 %v1791_v35, %v1853_v51  ;;  %v1030_v29 = vsub.f32 %v1801_v36, %v1859_v31  ;;  %v1031_v25 = vsub.f32 %v1805_v42, %v1859_v31  ;;  %v1034_v35 = vsub.f32 %v1789_v48, %v1857_v50 }
 0x389   :  { %v1046_v21 = vadd.f32 1e-05, %v1022_v54  ;;  %v1048_v61 = vadd.f32 1e-05, %v1024_v52  ;;  %v1056_v0 = vmul.f32 %v1268_v32, %v1038_v41  ;;  %v1019_v53 = vmul.f32 %v1868_v49, %v1868_v49 }
 0x38a   :  { %v1001_v45 = vpop.xlane.xlu0 %1000  ;;  %v1035_v51 = vsub.f32 %v1803_v12, %v1857_v50  ;;  %v1036_v31 = vsub.f32 %v1817_v37, %v1868_v49 }
 0x38b   :  { %1273 = vrsqrt.f32 %v1046_v21  ;;  %v1013_v57 = vmul.f32 0.0051020407, %v1001_v45  ;;  %1064 = vperm.xlu1 %1254, %v1056_v0  }
 0x38c   :  { %1275 = vrsqrt.f32 %v1048_v61  ;;  %v1128_v22 = vpop.permute.xlu1 %1127 }
 0x38d   :  { %v1025_v62 = vsub.f32 %v1013_v57, %v1019_v53 }
 0x38e   :  { %v1270_v2 = vpop.eup %1269 }
 0x38f   :  { %v1049_v63 = vadd.f32 1e-05, %v1025_v62  ;;  %v1059_v1 = vmul.f32 %v1270_v2, %v1041_v58 }
 0x391   :  { %1277 = vrsqrt.f32 %v1049_v63  ;;  %1079 = vperm.xlu1 %1254, %v1059_v1   ;;  %v1037_v63 = vsub.f32 %v1825_v17, %v1868_v49 }
 0x392   :  { %v1272_v60 = vpop.eup %1271  ;;  %v1113_v3 = vpop.permute.xlu0 %1112 }
 0x393   :  { %v1057_v5 = vmul.f32 %v1272_v60, %v1039_v20 }
 0x395   :  { %1069 = vperm.xlu0 %1253, %v1057_v5  }
 0x396   :  { %v1123_v34 = vpop.permute.xlu0 %1122 }
 0x398   :  { %v1274_v39 = vpop.eup %1273 }
 0x399   :  { %v1276_v4 = vpop.eup %1275  ;;  %v1058_v23 = vmul.f32 %v1274_v39, %v1040_v11 }
 0x39a   :  { %v1060_v13 = vmul.f32 %v1276_v4, %v1042_v43 }
 0x39b   :  { %1074 = vperm.xlu1 %1254, %v1058_v23  }
 0x39c   :  { %1084 = vperm.xlu0 %1253, %v1060_v13  }
 0x39e   :  { %v1278_v9 = vpop.eup %1277 }
 0x39f   :  { %v1061_v10 = vmul.f32 %v1278_v9, %v1043_v19 }
 0x3a0   :  { %1132 = vperm.xlu0 %1253, %v1108_v26  }
 0x3a1   :  { %1089 = vperm.xlu1 %1254, %v1061_v10  }
 0x3a5   :  { %1137 = vperm.xlu1 %1254, %v1109_v15  }
 0x406   :  { %v1065_v59 = vpop.permute.xlu1 %1064 }
 0x407   :  { %v1092_v24 = vmul.f32 %v1065_v59, %v1026_v27  ;;  %v1093_v44 = vmul.f32 %v1065_v59, %v1027_v14 }
 0x409   :  { %v1140_v46 = vadd.f32 %v1113_v3, %v1092_v24  ;;  %v1141_v28 = vadd.f32 %v1113_v3, %v1093_v44 }
 0x40b   :  { %1152 = vst [vmem:[#allocation5] sm:$0xff] %v1140_v46  ;;  %1153 = vst [vmem:[#allocation5 + $0x8] sm:$0xff] %v1141_v28 }
 0x40c   :  { %v1080_v38 = vpop.permute.xlu1 %1079 }
 0x40d   :  { %v1098_v40 = vmul.f32 %v1080_v38, %v1032_v30  ;;  %v1099_v6 = vmul.f32 %v1080_v38, %v1033_v7 }
 0x40f   :  { %v1146_v18 = vadd.f32 %v1128_v22, %v1098_v40  ;;  %v1147_v56 = vadd.f32 %v1128_v22, %v1099_v6 }
 0x410   :  { %v1070_v41 = vpop.permute.xlu0 %1069 }
 0x411   :  { %1158 = vst [vmem:[#allocation5 + $0x30] sm:$0xff] %v1146_v18  ;;  %1159 = vst [vmem:[#allocation5 + $0x38] sm:$0xff] %v1147_v56  ;;  %v1094_v54 = vmul.f32 %v1070_v41, %v1028_v55  ;;  %v1095_v47 = vmul.f32 %v1070_v41, %v1029_v8 }
 0x413   :  { %v1142_v52 = vadd.f32 %v1118_v16, %v1094_v54  ;;  %v1143_v32 = vadd.f32 %v1118_v16, %v1095_v47 }
 0x415   :  { %1154 = vst [vmem:[#allocation5 + $0x10] sm:$0xff] %v1142_v52  ;;  %1155 = vst [vmem:[#allocation5 + $0x18] sm:$0xff] %v1143_v32 }
 0x416   :  { %v1075_v21 = vpop.permute.xlu1 %1074 }
 0x417   :  { %v1096_v33 = vmul.f32 %v1075_v21, %v1030_v29  ;;  %v1097_v61 = vmul.f32 %v1075_v21, %v1031_v25  ;;  %v1085_v0 = vpop.permute.xlu0 %1084 }
 0x418   :  { %v1100_v57 = vmul.f32 %v1085_v0, %v1034_v35  ;;  %v1101_v58 = vmul.f32 %v1085_v0, %v1035_v51 }
 0x419   :  { %v1144_v45 = vadd.f32 %v1123_v34, %v1096_v33  ;;  %v1145_v53 = vadd.f32 %v1123_v34, %v1097_v61 }
 0x41b   :  { %1156 = vst [vmem:[#allocation5 + $0x20] sm:$0xff] %v1144_v45  ;;  %1157 = vst [vmem:[#allocation5 + $0x28] sm:$0xff] %v1145_v53  ;;  %v1133_v36 = vpop.permute.xlu0 %1132 }
 0x41c   :  { %v1148_v62 = vadd.f32 %v1133_v36, %v1100_v57  ;;  %v1149_v2 = vadd.f32 %v1133_v36, %v1101_v58  ;;  %v1090_v42 = vpop.permute.xlu1 %1089 }
 0x41d   :  { %v1102_v48 = vmul.f32 %v1090_v42, %v1036_v31  ;;  %v1103_v12 = vmul.f32 %v1090_v42, %v1037_v63 }
 0x41e   :  { %1160 = vst [vmem:[#allocation5 + $0x40] sm:$0xff] %v1148_v62  ;;  %1161 = vst [vmem:[#allocation5 + $0x48] sm:$0xff] %v1149_v2 }
 0x420   :  { %v1138_v50 = vpop.permute.xlu1 %1137 }
 0x421   :  { %v1150_v1 = vadd.f32 %v1138_v50, %v1102_v48  ;;  %v1151_v20 = vadd.f32 %v1138_v50, %v1103_v12 }
 0x423   :  { %1162 = vst [vmem:[#allocation5 + $0x50] sm:$0xff] %v1150_v1  ;;  %1163 = vst [vmem:[#allocation5 + $0x58] sm:$0xff] %v1151_v20 }
 0x424   :  { %1310 = shalt.err (!%p1307_p9)
}
 0x425   :  { %1175 = dma.vmem_to_hbm [thread:$0]  %s1170_s5, 1536, %s1929_s6, [#allocation4], %s1324_s24, %s1324_s24, %s1325_s25  }
 0x426   :  { %1321 = dma.done.wait [#allocation4], 1536  }
 0x427   :  { %1322 = vsyncadd [#allocation4], 4294965760 }
 0x428   :  { %1179 = vsyncpa [#allocation3], 1 }
 0x429   :  { %1180 = vsyncpa [#allocation4], 1 }

</bundles_post_ra>
